<compile_context>
chip_gen: v7x
topology: tpu7x:2x2x1
jax: 0.10.0
libtpu: 0.0.40
codegen_flags: <defaults>
</compile_context>

<pallas_src>
import functools
import math

import jax
import jax.numpy as jnp
from jax.experimental import pallas as pl
from jax.experimental.pallas import tpu as pltpu


def mha_kernel(q_ref, qm_ref, k_ref, km_ref, v_ref,
               wq_ref, wk_ref, wv_ref, wo_ref,
               o_ref, kpt_sc, vp_sc, *, num_heads):
    bt, tq, dq = q_ref.shape
    _, lk, dk = k_ref.shape
    dv = v_ref.shape[-1]
    hid = wq_ref.shape[-1]
    dh = hid // num_heads

    qi = pl.program_id(1)

    # ---- K/V projections: once per batch block, cached across query tiles ----
    @pl.when(qi == 0)
    def _():
        k2 = k_ref[...].reshape(bt * lk, dk).astype(jnp.bfloat16)
        v2 = v_ref[...].reshape(bt * lk, dv).astype(jnp.bfloat16)
        kp = jnp.dot(k2, wk_ref[...], preferred_element_type=jnp.float32)
        vp = jnp.dot(v2, wv_ref[...], preferred_element_type=jnp.float32)
        # Single transpose per batch block -> (bt, H, Lk): head slices become
        # contiguous sublane row-blocks and score matmuls are lane-dense in Lk.
        kpt_sc[...] = jnp.transpose(
            kp.reshape(bt, lk, hid), (0, 2, 1)).astype(jnp.bfloat16)
        vp_sc[...] = vp.reshape(bt, lk, hid).astype(jnp.bfloat16)

    # ---- Q projection for this query tile (1/sqrt(dh) folded into W_q) ----
    q2 = q_ref[...].reshape(bt * tq, dq).astype(jnp.bfloat16)
    qp = jnp.dot(q2, wq_ref[...],
                 preferred_element_type=jnp.float32).astype(jnp.bfloat16)  # (bt*tq, H)

    gated = []
    for b in range(bt):                     # bt is small and static
        km = km_ref[b]                      # (1, Lk)  key mask, f32
        qm = qm_ref[b]                      # (tq, 1)  query mask, f32
        qp_b = qp[b * tq:(b + 1) * tq, :]   # (tq, H)  bf16
        kpt_b = kpt_sc[b]                   # (H, Lk)  bf16
        vp_b = vp_sc[b]                     # (Lk, H)  bf16

        atts = []
        for h in range(num_heads):          # static unroll (small num_heads)
            lo = h * dh
            qh = qp_b[:, lo:lo + dh]        # (tq, dh)
            kh_t = kpt_b[lo:lo + dh, :]     # (dh, Lk) contiguous sublane block
            vh = vp_b[:, lo:lo + dh]        # (Lk, dh)

            scores = jnp.dot(qh, kh_t,
                             preferred_element_type=jnp.float32)   # (tq, Lk)

            # ESIM masked_softmax, fused renormalization; f32 VPU/EUP math,
            # reciprocal on the otherwise-idle EUP slot.
            masked = scores * km
            m = jnp.max(masked, axis=-1, keepdims=True)
            pe = jnp.exp(masked - m) * km
            denom = jnp.sum(pe, axis=-1, keepdims=True) + 1e-13
            p = (pe * pl.reciprocal(denom, approx=False)).astype(jnp.bfloat16)

            # weighted_sum head tile stays in registers (no lane-sparse store).
            atts.append(jnp.dot(p, vh, preferred_element_type=jnp.float32))

        concat = jnp.concatenate(atts, axis=-1)     # (tq, H) in registers
        gated.append(concat * qm)                   # query-mask gate, lane-dense

    # Single full-depth W_o projection over the whole batch block.
    big = jnp.concatenate(gated, axis=0).astype(jnp.bfloat16)   # (bt*tq, H)
    out = jnp.dot(big, wo_ref[...], preferred_element_type=jnp.float32)
    o_ref[...] = out.reshape(bt, tq, hid).astype(o_ref.dtype)


def prepare_params(wq_t, wk_t, wv_t, wo_t, num_heads):
    """One-time parameter prep: fold the 1/sqrt(dh) scale into W_q, cast bf16."""
    hidden = wq_t.shape[1]
    assert hidden % num_heads == 0, "hidden_size must be divisible by num_heads"
    scale = 1.0 / math.sqrt(hidden // num_heads)
    return ((wq_t * scale).astype(jnp.bfloat16),
            wk_t.astype(jnp.bfloat16),
            wv_t.astype(jnp.bfloat16),
            wo_t.astype(jnp.bfloat16))


def _largest_divisor(n, cap):
    d = min(n, cap)
    while n % d:
        d -= 1
    return d


def multi_head_attention(query, query_mask, key, key_mask, value,
                         wq_bf, wk_bf, wv_bf, wo_bf, num_heads,
                         batch_tile=None, q_tile=None):
    B, Lq, Dq = query.shape
    _, Lk, Dk = key.shape
    Dv = value.shape[2]
    H = wq_bf.shape[1]
    assert H % num_heads == 0, "hidden_size must be divisible by num_heads"

    bt = batch_tile if batch_tile is not None else _largest_divisor(B, 8)
    tq = q_tile if q_tile is not None else _largest_divisor(Lq, 256)
    assert B % bt == 0 and Lq % tq == 0

    qm = query_mask.astype(jnp.float32).reshape(B, Lq, 1)
    km = key_mask.astype(jnp.float32).reshape(B, 1, Lk)

    kernel = functools.partial(mha_kernel, num_heads=num_heads)

    return pl.pallas_call(
        kernel,
        out_shape=jax.ShapeDtypeStruct((B, Lq, H), jnp.float32),
        grid_spec=pltpu.PrefetchScalarGridSpec(
            num_scalar_prefetch=0,
            grid=(B // bt, Lq // tq),
            in_specs=[
                pl.BlockSpec((bt, tq, Dq), lambda nb, qi: (nb, qi, 0)),  # query
                pl.BlockSpec((bt, tq, 1),  lambda nb, qi: (nb, qi, 0)),  # query_mask
                pl.BlockSpec((bt, Lk, Dk), lambda nb, qi: (nb, 0, 0)),   # key
                pl.BlockSpec((bt, 1, Lk),  lambda nb, qi: (nb, 0, 0)),   # key_mask
                pl.BlockSpec((bt, Lk, Dv), lambda nb, qi: (nb, 0, 0)),   # value
                # Grid-invariant bf16 weights (scale pre-folded into W_q).
                pl.BlockSpec((Dq, H), lambda nb, qi: (0, 0)),            # W_q^T
                pl.BlockSpec((Dk, H), lambda nb, qi: (0, 0)),            # W_k^T
                pl.BlockSpec((Dv, H), lambda nb, qi: (0, 0)),            # W_v^T
                pl.BlockSpec((H, H),  lambda nb, qi: (0, 0)),            # W_o^T
            ],
            out_specs=pl.BlockSpec((bt, tq, H), lambda nb, qi: (nb, qi, 0)),
            scratch_shapes=[
                pltpu.VMEM((bt, H, Lk), jnp.bfloat16),   # cached K^T projection
                pltpu.VMEM((bt, Lk, H), jnp.bfloat16),   # cached V projection
            ],
        ),
        compiler_params=pltpu.CompilerParams(
            # batch blocks independent (megacore); query tiles reuse the cached
            # K/V projections written at qi == 0, so keep them sequential.
            dimension_semantics=("parallel", "arbitrary"),
            # Raise the scoped VMEM limit (defaults: 16/32 MiB) so larger
            # Lq/Lk tiles remain possible; still within v7x's 64 MiB physical.
            vmem_limit_bytes=64 * 1024 * 1024,
        ),
    )(query, qm, key, km, value, wq_bf, wk_bf, wv_bf, wo_bf)


def reference_mha(query, query_mask, key, key_mask, value,
                  wq_t, wk_t, wv_t, wo_t, num_heads):
    """Pure-JAX mirror of the PyTorch forward (f32, for verification)."""
    B, Lq, _ = query.shape
    H = wq_t.shape[1]
    dh = H // num_heads

    def split_heads(x):  # transpose_qkv
        return (x.reshape(B, -1, num_heads, dh)
                 .transpose(0, 2, 1, 3)
                 .reshape(B * num_heads, -1, dh))

    qh = split_heads(query @ wq_t)
    kh = split_heads(key @ wk_t)
    vh = split_heads(value @ wv_t)
    qm = jnp.repeat(query_mask.astype(jnp.float32), num_heads, axis=0)
    km = jnp.repeat(key_mask.astype(jnp.float32), num_heads, axis=0)

    scores = jnp.einsum('bqd,bkd->bqk', qh, kh) / math.sqrt(dh)
    masked = scores * km[:, None, :]
    p = jax.nn.softmax(masked, axis=-1)
    p = p * km[:, None, :]
    p = p / (p.sum(-1, keepdims=True) + 1e-13)
    att = jnp.einsum('bqk,bkd->bqd', p, vh) * qm[:, :, None]
    concat = (att.reshape(B, num_heads, Lq, dh)
                 .transpose(0, 2, 1, 3)
                 .reshape(B, Lq, H))  # transpose_output
    return concat @ wo_t


if __name__ == "__main__":
    B, Lq, Lk = 2, 8, 8
    query_size = key_size = value_size = 16
    hidden = 32
    num_heads = 4

    key0 = jax.random.PRNGKey(0)
    ks = jax.random.split(key0, 8)

    query = jax.random.normal(ks[0], (B, Lq, query_size), jnp.float32)
    key_t = jax.random.normal(ks[1], (B, Lk, key_size), jnp.float32)
    value = jax.random.normal(ks[2], (B, Lk, value_size), jnp.float32)

    # 0/1 float masks (valid prefix, padded tail).
    query_mask = (jnp.arange(Lq)[None, :] < jnp.array([[Lq], [Lq - 3]])[:, 0:1]
                  ).astype(jnp.float32)
    key_mask = (jnp.arange(Lk)[None, :] < jnp.array([[Lk - 2], [Lk]])[:, 0:1]
                ).astype(jnp.float32)

    # Deterministic parameters, stored as (in_features, out_features) = W.T
    wq_t = 0.1 * jax.random.normal(ks[3], (query_size, hidden), jnp.float32)
    wk_t = 0.1 * jax.random.normal(ks[4], (key_size, hidden), jnp.float32)
    wv_t = 0.1 * jax.random.normal(ks[5], (value_size, hidden), jnp.float32)
    wo_t = 0.1 * jax.random.normal(ks[6], (hidden, hidden), jnp.float32)

    # One-time parameter prep: bf16 weights, scale folded into W_q.
    wq_bf, wk_bf, wv_bf, wo_bf = prepare_params(wq_t, wk_t, wv_t, wo_t, num_heads)

    out = multi_head_attention(query, query_mask, key_t, key_mask, value,
                               wq_bf, wk_bf, wv_bf, wo_bf, num_heads)
    out = jax.block_until_ready(out)

    ref = reference_mha(query, query_mask, key_t, key_mask, value,
                        wq_t, wk_t, wv_t, wo_t, num_heads)

    assert out.shape == (B, Lq, hidden)
    # bf16 MXU operands => looser tolerance than pure f32.
    assert jnp.allclose(out, ref, atol=2e-2, rtol=2e-2), "mismatch vs reference"
    print("KERNEL_OK")
</pallas_src>

<mosaic_0001>
module attributes {stable_mosaic.version = 11 : i64} {
  func.func @mha_kernel(%arg0: i32, %arg1: i32, %arg2: memref<2x8x16xf32, #tpu.memory_space<vmem>>, %arg3: memref<2x8x1xf32, #tpu.memory_space<vmem>>, %arg4: memref<2x8x16xf32, #tpu.memory_space<vmem>>, %arg5: memref<2x1x8xf32, #tpu.memory_space<vmem>>, %arg6: memref<2x8x16xf32, #tpu.memory_space<vmem>>, %arg7: memref<16x32xbf16, #tpu.memory_space<vmem>>, %arg8: memref<16x32xbf16, #tpu.memory_space<vmem>>, %arg9: memref<16x32xbf16, #tpu.memory_space<vmem>>, %arg10: memref<32x32xbf16, #tpu.memory_space<vmem>>, %arg11: memref<2x8x32xf32, #tpu.memory_space<vmem>>, %arg12: memref<2x32x8xbf16, #tpu.memory_space<vmem>>, %arg13: memref<2x8x32xbf16, #tpu.memory_space<vmem>>) attributes {dimension_semantics = [#tpu.dimension_semantics<parallel>, #tpu.dimension_semantics<arbitrary>], iteration_bounds = array<i64: 1, 1>, scalar_prefetch = 0 : i64, scratch_operands = 2 : i64, tpu.core_type = #tpu.core_type<tc>, window_params = [{transform_indices = @transform_0, window_bounds = array<i64: 2, 8, 16>}, {transform_indices = @transform_1, window_bounds = array<i64: 2, 8, 1>}, {transform_indices = @transform_2, window_bounds = array<i64: 2, 8, 16>}, {transform_indices = @transform_3, window_bounds = array<i64: 2, 1, 8>}, {transform_indices = @transform_4, window_bounds = array<i64: 2, 8, 16>}, {pipeline_mode = #tpu.pipeline_mode<synchronous>, transform_indices = @transform_5, window_bounds = array<i64: 16, 32>}, {pipeline_mode = #tpu.pipeline_mode<synchronous>, transform_indices = @transform_6, window_bounds = array<i64: 16, 32>}, {pipeline_mode = #tpu.pipeline_mode<synchronous>, transform_indices = @transform_7, window_bounds = array<i64: 16, 32>}, {pipeline_mode = #tpu.pipeline_mode<synchronous>, transform_indices = @transform_8, window_bounds = array<i64: 32, 32>}, {transform_indices = @transform_9, window_bounds = array<i64: 2, 8, 32>}]} {
    %c0_i32 = arith.constant 0 : i32
    %0 = arith.cmpi eq, %arg1, %c0_i32 : i32
    %1 = arith.extui %0 : i1 to i32
    %c0_i32_0 = arith.constant 0 : i32
    %2 = arith.cmpi ne, %1, %c0_i32_0 : i32
    scf.if %2 {
      %c0_74 = arith.constant 0 : index
      %c0_75 = arith.constant 0 : index
      %c0_76 = arith.constant 0 : index
      %215 = vector.load %arg4[%c0_74, %c0_75, %c0_76] : memref<2x8x16xf32, #tpu.memory_space<vmem>>, vector<2x8x16xf32>
      %216 = vector.shape_cast %215 : vector<2x8x16xf32> to vector<16x16xf32>
      %217 = arith.truncf %216 : vector<16x16xf32> to vector<16x16xbf16>
      %c0_77 = arith.constant 0 : index
      %c0_78 = arith.constant 0 : index
      %c0_79 = arith.constant 0 : index
      %218 = vector.load %arg6[%c0_77, %c0_78, %c0_79] : memref<2x8x16xf32, #tpu.memory_space<vmem>>, vector<2x8x16xf32>
      %219 = vector.shape_cast %218 : vector<2x8x16xf32> to vector<16x16xf32>
      %220 = arith.truncf %219 : vector<16x16xf32> to vector<16x16xbf16>
      %c0_80 = arith.constant 0 : index
      %c0_81 = arith.constant 0 : index
      %221 = vector.load %arg8[%c0_80, %c0_81] : memref<16x32xbf16, #tpu.memory_space<vmem>>, vector<16x32xbf16>
      %cst_82 = arith.constant dense<0.000000e+00> : vector<16x32xf32>
      %222 = tpu.matmul %217, %221, %cst_82 {dimension_numbers = #tpu.dot_dimension_numbers<[1], [0], [0], [1], [0, 0, 1, 1], [], []>} : vector<16x16xbf16>, vector<16x32xbf16>, vector<16x32xf32> -> vector<16x32xf32>
      %c0_83 = arith.constant 0 : index
      %c0_84 = arith.constant 0 : index
      %223 = vector.load %arg9[%c0_83, %c0_84] : memref<16x32xbf16, #tpu.memory_space<vmem>>, vector<16x32xbf16>
      %cst_85 = arith.constant dense<0.000000e+00> : vector<16x32xf32>
      %224 = tpu.matmul %220, %223, %cst_85 {dimension_numbers = #tpu.dot_dimension_numbers<[1], [0], [0], [1], [0, 0, 1, 1], [], []>} : vector<16x16xbf16>, vector<16x32xbf16>, vector<16x32xf32> -> vector<16x32xf32>
      %225 = vector.shape_cast %222 : vector<16x32xf32> to vector<2x8x32xf32>
      %226 = tpu.transpose %225, [0, 2, 1] : vector<2x8x32xf32> -> vector<2x32x8xf32>
      %227 = arith.truncf %226 : vector<2x32x8xf32> to vector<2x32x8xbf16>
      %c0_86 = arith.constant 0 : index
      %c0_87 = arith.constant 0 : index
      %c0_88 = arith.constant 0 : index
      %228 = vector.load %arg12[%c0_86, %c0_87, %c0_88] : memref<2x32x8xbf16, #tpu.memory_space<vmem>>, vector<2x32x8xbf16>
      tpu.vector_store %arg12[%c0_86, %c0_87, %c0_88], %227 {strides = array<i32>} : memref<2x32x8xbf16, #tpu.memory_space<vmem>>, vector<2x32x8xbf16>,
      %229 = vector.shape_cast %224 : vector<16x32xf32> to vector<2x8x32xf32>
      %230 = arith.truncf %229 : vector<2x8x32xf32> to vector<2x8x32xbf16>
      %c0_89 = arith.constant 0 : index
      %c0_90 = arith.constant 0 : index
      %c0_91 = arith.constant 0 : index
      %231 = vector.load %arg13[%c0_89, %c0_90, %c0_91] : memref<2x8x32xbf16, #tpu.memory_space<vmem>>, vector<2x8x32xbf16>
      tpu.vector_store %arg13[%c0_89, %c0_90, %c0_91], %230 {strides = array<i32>} : memref<2x8x32xbf16, #tpu.memory_space<vmem>>, vector<2x8x32xbf16>,
    } else {
    }
    %c0 = arith.constant 0 : index
    %c0_1 = arith.constant 0 : index
    %c0_2 = arith.constant 0 : index
    %3 = vector.load %arg2[%c0, %c0_1, %c0_2] : memref<2x8x16xf32, #tpu.memory_space<vmem>>, vector<2x8x16xf32>
    %4 = vector.shape_cast %3 : vector<2x8x16xf32> to vector<16x16xf32>
    %5 = arith.truncf %4 : vector<16x16xf32> to vector<16x16xbf16>
    %c0_3 = arith.constant 0 : index
    %c0_4 = arith.constant 0 : index
    %6 = vector.load %arg7[%c0_3, %c0_4] : memref<16x32xbf16, #tpu.memory_space<vmem>>, vector<16x32xbf16>
    %cst = arith.constant dense<0.000000e+00> : vector<16x32xf32>
    %7 = tpu.matmul %5, %6, %cst {dimension_numbers = #tpu.dot_dimension_numbers<[1], [0], [0], [1], [0, 0, 1, 1], [], []>} : vector<16x16xbf16>, vector<16x32xbf16>, vector<16x32xf32> -> vector<16x32xf32>
    %8 = arith.truncf %7 : vector<16x32xf32> to vector<16x32xbf16>
    %c0_5 = arith.constant 0 : index
    %c0_6 = arith.constant 0 : index
    %c0_7 = arith.constant 0 : index
    %9 = vector.load %arg5[%c0_5, %c0_6, %c0_7] : memref<2x1x8xf32, #tpu.memory_space<vmem>>, vector<1x1x8xf32>
    %10 = vector.shape_cast %9 : vector<1x1x8xf32> to vector<1x8xf32>
    %c0_8 = arith.constant 0 : index
    %c0_9 = arith.constant 0 : index
    %c0_10 = arith.constant 0 : index
    %11 = vector.load %arg3[%c0_8, %c0_9, %c0_10] : memref<2x8x1xf32, #tpu.memory_space<vmem>>, vector<1x8x1xf32>
    %12 = vector.shape_cast %11 : vector<1x8x1xf32> to vector<8x1xf32>
    %13 = vector.extract_strided_slice %8 {offsets = [0, 0], sizes = [8, 32], strides = [1, 1]} : vector<16x32xbf16> to vector<8x32xbf16>
    %c0_11 = arith.constant 0 : index
    %c0_12 = arith.constant 0 : index
    %c0_13 = arith.constant 0 : index
    %14 = vector.load %arg12[%c0_11, %c0_12, %c0_13] : memref<2x32x8xbf16, #tpu.memory_space<vmem>>, vector<1x32x8xbf16>
    %15 = vector.shape_cast %14 : vector<1x32x8xbf16> to vector<32x8xbf16>
    %c0_14 = arith.constant 0 : index
    %c0_15 = arith.constant 0 : index
    %c0_16 = arith.constant 0 : index
    %16 = vector.load %arg13[%c0_14, %c0_15, %c0_16] : memref<2x8x32xbf16, #tpu.memory_space<vmem>>, vector<1x8x32xbf16>
    %17 = vector.shape_cast %16 : vector<1x8x32xbf16> to vector<8x32xbf16>
    %18 = vector.extract_strided_slice %13 {offsets = [0, 0], sizes = [8, 8], strides = [1, 1]} : vector<8x32xbf16> to vector<8x8xbf16>
    %19 = vector.extract_strided_slice %15 {offsets = [0, 0], sizes = [8, 8], strides = [1, 1]} : vector<32x8xbf16> to vector<8x8xbf16>
    %20 = vector.extract_strided_slice %17 {offsets = [0, 0], sizes = [8, 8], strides = [1, 1]} : vector<8x32xbf16> to vector<8x8xbf16>
    %cst_17 = arith.constant dense<0.000000e+00> : vector<8x8xf32>
    %21 = tpu.matmul %18, %19, %cst_17 {dimension_numbers = #tpu.dot_dimension_numbers<[1], [0], [0], [1], [0, 0, 1, 1], [], []>} : vector<8x8xbf16>, vector<8x8xbf16>, vector<8x8xf32> -> vector<8x8xf32>
    %22 = vector.broadcast %10 : vector<1x8xf32> to vector<8x8xf32>
    %23 = arith.mulf %21, %22 : vector<8x8xf32>
    %cst_18 = arith.constant dense<0xFF800000> : vector<8xf32>
    %24 = vector.multi_reduction <maximumf>, %23, %cst_18 [1] : vector<8x8xf32> to vector<8xf32>
    %25 = vector.shape_cast %24 : vector<8xf32> to vector<8x1xf32>
    %26 = vector.broadcast %25 : vector<8x1xf32> to vector<8x8xf32>
    %27 = arith.subf %23, %26 : vector<8x8xf32>
    %28 = math.exp %27 : vector<8x8xf32>
    %29 = vector.broadcast %10 : vector<1x8xf32> to vector<8x8xf32>
    %30 = arith.mulf %28, %29 : vector<8x8xf32>
    %cst_19 = arith.constant dense<0.000000e+00> : vector<8xf32>
    %31 = vector.multi_reduction <add>, %30, %cst_19 [1] : vector<8x8xf32> to vector<8xf32>
    %32 = vector.shape_cast %31 : vector<8xf32> to vector<8x1xf32>
    %cst_20 = arith.constant 9.99999982E-14 : f32
    %33 = vector.broadcast %cst_20 : f32 to vector<8x1xf32>
    %34 = arith.addf %32, %33 : vector<8x1xf32>
    %35 = tpu.reciprocal %34 : vector<8x1xf32> -> vector<8x1xf32>
    %36 = vector.broadcast %35 : vector<8x1xf32> to vector<8x8xf32>
    %37 = arith.mulf %30, %36 : vector<8x8xf32>
    %38 = arith.truncf %37 : vector<8x8xf32> to vector<8x8xbf16>
    %cst_21 = arith.constant dense<0.000000e+00> : vector<8x8xf32>
    %39 = tpu.matmul %38, %20, %cst_21 {dimension_numbers = #tpu.dot_dimension_numbers<[1], [0], [0], [1], [0, 0, 1, 1], [], []>} : vector<8x8xbf16>, vector<8x8xbf16>, vector<8x8xf32> -> vector<8x8xf32>
    %40 = vector.extract_strided_slice %13 {offsets = [0, 8], sizes = [8, 8], strides = [1, 1]} : vector<8x32xbf16> to vector<8x8xbf16>
    %41 = vector.extract_strided_slice %15 {offsets = [8, 0], sizes = [8, 8], strides = [1, 1]} : vector<32x8xbf16> to vector<8x8xbf16>
    %42 = vector.extract_strided_slice %17 {offsets = [0, 8], sizes = [8, 8], strides = [1, 1]} : vector<8x32xbf16> to vector<8x8xbf16>
    %cst_22 = arith.constant dense<0.000000e+00> : vector<8x8xf32>
    %43 = tpu.matmul %40, %41, %cst_22 {dimension_numbers = #tpu.dot_dimension_numbers<[1], [0], [0], [1], [0, 0, 1, 1], [], []>} : vector<8x8xbf16>, vector<8x8xbf16>, vector<8x8xf32> -> vector<8x8xf32>
    %44 = vector.broadcast %10 : vector<1x8xf32> to vector<8x8xf32>
    %45 = arith.mulf %43, %44 : vector<8x8xf32>
    %cst_23 = arith.constant dense<0xFF800000> : vector<8xf32>
    %46 = vector.multi_reduction <maximumf>, %45, %cst_23 [1] : vector<8x8xf32> to vector<8xf32>
    %47 = vector.shape_cast %46 : vector<8xf32> to vector<8x1xf32>
    %48 = vector.broadcast %47 : vector<8x1xf32> to vector<8x8xf32>
    %49 = arith.subf %45, %48 : vector<8x8xf32>
    %50 = math.exp %49 : vector<8x8xf32>
    %51 = vector.broadcast %10 : vector<1x8xf32> to vector<8x8xf32>
    %52 = arith.mulf %50, %51 : vector<8x8xf32>
    %cst_24 = arith.constant dense<0.000000e+00> : vector<8xf32>
    %53 = vector.multi_reduction <add>, %52, %cst_24 [1] : vector<8x8xf32> to vector<8xf32>
    %54 = vector.shape_cast %53 : vector<8xf32> to vector<8x1xf32>
    %cst_25 = arith.constant 9.99999982E-14 : f32
    %55 = vector.broadcast %cst_25 : f32 to vector<8x1xf32>
    %56 = arith.addf %54, %55 : vector<8x1xf32>
    %57 = tpu.reciprocal %56 : vector<8x1xf32> -> vector<8x1xf32>
    %58 = vector.broadcast %57 : vector<8x1xf32> to vector<8x8xf32>
    %59 = arith.mulf %52, %58 : vector<8x8xf32>
    %60 = arith.truncf %59 : vector<8x8xf32> to vector<8x8xbf16>
    %cst_26 = arith.constant dense<0.000000e+00> : vector<8x8xf32>
    %61 = tpu.matmul %60, %42, %cst_26 {dimension_numbers = #tpu.dot_dimension_numbers<[1], [0], [0], [1], [0, 0, 1, 1], [], []>} : vector<8x8xbf16>, vector<8x8xbf16>, vector<8x8xf32> -> vector<8x8xf32>
    %62 = vector.extract_strided_slice %13 {offsets = [0, 16], sizes = [8, 8], strides = [1, 1]} : vector<8x32xbf16> to vector<8x8xbf16>
    %63 = vector.extract_strided_slice %15 {offsets = [16, 0], sizes = [8, 8], strides = [1, 1]} : vector<32x8xbf16> to vector<8x8xbf16>
    %64 = vector.extract_strided_slice %17 {offsets = [0, 16], sizes = [8, 8], strides = [1, 1]} : vector<8x32xbf16> to vector<8x8xbf16>
    %cst_27 = arith.constant dense<0.000000e+00> : vector<8x8xf32>
    %65 = tpu.matmul %62, %63, %cst_27 {dimension_numbers = #tpu.dot_dimension_numbers<[1], [0], [0], [1], [0, 0, 1, 1], [], []>} : vector<8x8xbf16>, vector<8x8xbf16>, vector<8x8xf32> -> vector<8x8xf32>
    %66 = vector.broadcast %10 : vector<1x8xf32> to vector<8x8xf32>
    %67 = arith.mulf %65, %66 : vector<8x8xf32>
    %cst_28 = arith.constant dense<0xFF800000> : vector<8xf32>
    %68 = vector.multi_reduction <maximumf>, %67, %cst_28 [1] : vector<8x8xf32> to vector<8xf32>
    %69 = vector.shape_cast %68 : vector<8xf32> to vector<8x1xf32>
    %70 = vector.broadcast %69 : vector<8x1xf32> to vector<8x8xf32>
    %71 = arith.subf %67, %70 : vector<8x8xf32>
    %72 = math.exp %71 : vector<8x8xf32>
    %73 = vector.broadcast %10 : vector<1x8xf32> to vector<8x8xf32>
    %74 = arith.mulf %72, %73 : vector<8x8xf32>
    %cst_29 = arith.constant dense<0.000000e+00> : vector<8xf32>
    %75 = vector.multi_reduction <add>, %74, %cst_29 [1] : vector<8x8xf32> to vector<8xf32>
    %76 = vector.shape_cast %75 : vector<8xf32> to vector<8x1xf32>
    %cst_30 = arith.constant 9.99999982E-14 : f32
    %77 = vector.broadcast %cst_30 : f32 to vector<8x1xf32>
    %78 = arith.addf %76, %77 : vector<8x1xf32>
    %79 = tpu.reciprocal %78 : vector<8x1xf32> -> vector<8x1xf32>
    %80 = vector.broadcast %79 : vector<8x1xf32> to vector<8x8xf32>
    %81 = arith.mulf %74, %80 : vector<8x8xf32>
    %82 = arith.truncf %81 : vector<8x8xf32> to vector<8x8xbf16>
    %cst_31 = arith.constant dense<0.000000e+00> : vector<8x8xf32>
    %83 = tpu.matmul %82, %64, %cst_31 {dimension_numbers = #tpu.dot_dimension_numbers<[1], [0], [0], [1], [0, 0, 1, 1], [], []>} : vector<8x8xbf16>, vector<8x8xbf16>, vector<8x8xf32> -> vector<8x8xf32>
    %84 = vector.extract_strided_slice %13 {offsets = [0, 24], sizes = [8, 8], strides = [1, 1]} : vector<8x32xbf16> to vector<8x8xbf16>
    %85 = vector.extract_strided_slice %15 {offsets = [24, 0], sizes = [8, 8], strides = [1, 1]} : vector<32x8xbf16> to vector<8x8xbf16>
    %86 = vector.extract_strided_slice %17 {offsets = [0, 24], sizes = [8, 8], strides = [1, 1]} : vector<8x32xbf16> to vector<8x8xbf16>
    %cst_32 = arith.constant dense<0.000000e+00> : vector<8x8xf32>
    %87 = tpu.matmul %84, %85, %cst_32 {dimension_numbers = #tpu.dot_dimension_numbers<[1], [0], [0], [1], [0, 0, 1, 1], [], []>} : vector<8x8xbf16>, vector<8x8xbf16>, vector<8x8xf32> -> vector<8x8xf32>
    %88 = vector.broadcast %10 : vector<1x8xf32> to vector<8x8xf32>
    %89 = arith.mulf %87, %88 : vector<8x8xf32>
    %cst_33 = arith.constant dense<0xFF800000> : vector<8xf32>
    %90 = vector.multi_reduction <maximumf>, %89, %cst_33 [1] : vector<8x8xf32> to vector<8xf32>
    %91 = vector.shape_cast %90 : vector<8xf32> to vector<8x1xf32>
    %92 = vector.broadcast %91 : vector<8x1xf32> to vector<8x8xf32>
    %93 = arith.subf %89, %92 : vector<8x8xf32>
    %94 = math.exp %93 : vector<8x8xf32>
    %95 = vector.broadcast %10 : vector<1x8xf32> to vector<8x8xf32>
    %96 = arith.mulf %94, %95 : vector<8x8xf32>
    %cst_34 = arith.constant dense<0.000000e+00> : vector<8xf32>
    %97 = vector.multi_reduction <add>, %96, %cst_34 [1] : vector<8x8xf32> to vector<8xf32>
    %98 = vector.shape_cast %97 : vector<8xf32> to vector<8x1xf32>
    %cst_35 = arith.constant 9.99999982E-14 : f32
    %99 = vector.broadcast %cst_35 : f32 to vector<8x1xf32>
    %100 = arith.addf %98, %99 : vector<8x1xf32>
    %101 = tpu.reciprocal %100 : vector<8x1xf32> -> vector<8x1xf32>
    %102 = vector.broadcast %101 : vector<8x1xf32> to vector<8x8xf32>
    %103 = arith.mulf %96, %102 : vector<8x8xf32>
    %104 = arith.truncf %103 : vector<8x8xf32> to vector<8x8xbf16>
    %cst_36 = arith.constant dense<0.000000e+00> : vector<8x8xf32>
    %105 = tpu.matmul %104, %86, %cst_36 {dimension_numbers = #tpu.dot_dimension_numbers<[1], [0], [0], [1], [0, 0, 1, 1], [], []>} : vector<8x8xbf16>, vector<8x8xbf16>, vector<8x8xf32> -> vector<8x8xf32>
    %106 = tpu.concatenate %39, %61, %83, %105 in 1 : vector<8x8xf32>, vector<8x8xf32>, vector<8x8xf32>, vector<8x8xf32> -> vector<8x32xf32>
    %107 = vector.broadcast %12 : vector<8x1xf32> to vector<8x32xf32>
    %108 = arith.mulf %106, %107 : vector<8x32xf32>
    %c1 = arith.constant 1 : index
    %c0_37 = arith.constant 0 : index
    %c0_38 = arith.constant 0 : index
    %109 = vector.load %arg5[%c1, %c0_37, %c0_38] : memref<2x1x8xf32, #tpu.memory_space<vmem>>, vector<1x1x8xf32>
    %110 = vector.shape_cast %109 : vector<1x1x8xf32> to vector<1x8xf32>
    %c1_39 = arith.constant 1 : index
    %c0_40 = arith.constant 0 : index
    %c0_41 = arith.constant 0 : index
    %111 = vector.load %arg3[%c1_39, %c0_40, %c0_41] : memref<2x8x1xf32, #tpu.memory_space<vmem>>, vector<1x8x1xf32>
    %112 = vector.shape_cast %111 : vector<1x8x1xf32> to vector<8x1xf32>
    %113 = vector.extract_strided_slice %8 {offsets = [8, 0], sizes = [8, 32], strides = [1, 1]} : vector<16x32xbf16> to vector<8x32xbf16>
    %c1_42 = arith.constant 1 : index
    %c0_43 = arith.constant 0 : index
    %c0_44 = arith.constant 0 : index
    %114 = vector.load %arg12[%c1_42, %c0_43, %c0_44] : memref<2x32x8xbf16, #tpu.memory_space<vmem>>, vector<1x32x8xbf16>
    %115 = vector.shape_cast %114 : vector<1x32x8xbf16> to vector<32x8xbf16>
    %c1_45 = arith.constant 1 : index
    %c0_46 = arith.constant 0 : index
    %c0_47 = arith.constant 0 : index
    %116 = vector.load %arg13[%c1_45, %c0_46, %c0_47] : memref<2x8x32xbf16, #tpu.memory_space<vmem>>, vector<1x8x32xbf16>
    %117 = vector.shape_cast %116 : vector<1x8x32xbf16> to vector<8x32xbf16>
    %118 = vector.extract_strided_slice %113 {offsets = [0, 0], sizes = [8, 8], strides = [1, 1]} : vector<8x32xbf16> to vector<8x8xbf16>
    %119 = vector.extract_strided_slice %115 {offsets = [0, 0], sizes = [8, 8], strides = [1, 1]} : vector<32x8xbf16> to vector<8x8xbf16>
    %120 = vector.extract_strided_slice %117 {offsets = [0, 0], sizes = [8, 8], strides = [1, 1]} : vector<8x32xbf16> to vector<8x8xbf16>
    %cst_48 = arith.constant dense<0.000000e+00> : vector<8x8xf32>
    %121 = tpu.matmul %118, %119, %cst_48 {dimension_numbers = #tpu.dot_dimension_numbers<[1], [0], [0], [1], [0, 0, 1, 1], [], []>} : vector<8x8xbf16>, vector<8x8xbf16>, vector<8x8xf32> -> vector<8x8xf32>
    %122 = vector.broadcast %110 : vector<1x8xf32> to vector<8x8xf32>
    %123 = arith.mulf %121, %122 : vector<8x8xf32>
    %cst_49 = arith.constant dense<0xFF800000> : vector<8xf32>
    %124 = vector.multi_reduction <maximumf>, %123, %cst_49 [1] : vector<8x8xf32> to vector<8xf32>
    %125 = vector.shape_cast %124 : vector<8xf32> to vector<8x1xf32>
    %126 = vector.broadcast %125 : vector<8x1xf32> to vector<8x8xf32>
    %127 = arith.subf %123, %126 : vector<8x8xf32>
    %128 = math.exp %127 : vector<8x8xf32>
    %129 = vector.broadcast %110 : vector<1x8xf32> to vector<8x8xf32>
    %130 = arith.mulf %128, %129 : vector<8x8xf32>
    %cst_50 = arith.constant dense<0.000000e+00> : vector<8xf32>
    %131 = vector.multi_reduction <add>, %130, %cst_50 [1] : vector<8x8xf32> to vector<8xf32>
    %132 = vector.shape_cast %131 : vector<8xf32> to vector<8x1xf32>
    %cst_51 = arith.constant 9.99999982E-14 : f32
    %133 = vector.broadcast %cst_51 : f32 to vector<8x1xf32>
    %134 = arith.addf %132, %133 : vector<8x1xf32>
    %135 = tpu.reciprocal %134 : vector<8x1xf32> -> vector<8x1xf32>
    %136 = vector.broadcast %135 : vector<8x1xf32> to vector<8x8xf32>
    %137 = arith.mulf %130, %136 : vector<8x8xf32>
    %138 = arith.truncf %137 : vector<8x8xf32> to vector<8x8xbf16>
    %cst_52 = arith.constant dense<0.000000e+00> : vector<8x8xf32>
    %139 = tpu.matmul %138, %120, %cst_52 {dimension_numbers = #tpu.dot_dimension_numbers<[1], [0], [0], [1], [0, 0, 1, 1], [], []>} : vector<8x8xbf16>, vector<8x8xbf16>, vector<8x8xf32> -> vector<8x8xf32>
    %140 = vector.extract_strided_slice %113 {offsets = [0, 8], sizes = [8, 8], strides = [1, 1]} : vector<8x32xbf16> to vector<8x8xbf16>
    %141 = vector.extract_strided_slice %115 {offsets = [8, 0], sizes = [8, 8], strides = [1, 1]} : vector<32x8xbf16> to vector<8x8xbf16>
    %142 = vector.extract_strided_slice %117 {offsets = [0, 8], sizes = [8, 8], strides = [1, 1]} : vector<8x32xbf16> to vector<8x8xbf16>
    %cst_53 = arith.constant dense<0.000000e+00> : vector<8x8xf32>
    %143 = tpu.matmul %140, %141, %cst_53 {dimension_numbers = #tpu.dot_dimension_numbers<[1], [0], [0], [1], [0, 0, 1, 1], [], []>} : vector<8x8xbf16>, vector<8x8xbf16>, vector<8x8xf32> -> vector<8x8xf32>
    %144 = vector.broadcast %110 : vector<1x8xf32> to vector<8x8xf32>
    %145 = arith.mulf %143, %144 : vector<8x8xf32>
    %cst_54 = arith.constant dense<0xFF800000> : vector<8xf32>
    %146 = vector.multi_reduction <maximumf>, %145, %cst_54 [1] : vector<8x8xf32> to vector<8xf32>
    %147 = vector.shape_cast %146 : vector<8xf32> to vector<8x1xf32>
    %148 = vector.broadcast %147 : vector<8x1xf32> to vector<8x8xf32>
    %149 = arith.subf %145, %148 : vector<8x8xf32>
    %150 = math.exp %149 : vector<8x8xf32>
    %151 = vector.broadcast %110 : vector<1x8xf32> to vector<8x8xf32>
    %152 = arith.mulf %150, %151 : vector<8x8xf32>
    %cst_55 = arith.constant dense<0.000000e+00> : vector<8xf32>
    %153 = vector.multi_reduction <add>, %152, %cst_55 [1] : vector<8x8xf32> to vector<8xf32>
    %154 = vector.shape_cast %153 : vector<8xf32> to vector<8x1xf32>
    %cst_56 = arith.constant 9.99999982E-14 : f32
    %155 = vector.broadcast %cst_56 : f32 to vector<8x1xf32>
    %156 = arith.addf %154, %155 : vector<8x1xf32>
    %157 = tpu.reciprocal %156 : vector<8x1xf32> -> vector<8x1xf32>
    %158 = vector.broadcast %157 : vector<8x1xf32> to vector<8x8xf32>
    %159 = arith.mulf %152, %158 : vector<8x8xf32>
    %160 = arith.truncf %159 : vector<8x8xf32> to vector<8x8xbf16>
    %cst_57 = arith.constant dense<0.000000e+00> : vector<8x8xf32>
    %161 = tpu.matmul %160, %142, %cst_57 {dimension_numbers = #tpu.dot_dimension_numbers<[1], [0], [0], [1], [0, 0, 1, 1], [], []>} : vector<8x8xbf16>, vector<8x8xbf16>, vector<8x8xf32> -> vector<8x8xf32>
    %162 = vector.extract_strided_slice %113 {offsets = [0, 16], sizes = [8, 8], strides = [1, 1]} : vector<8x32xbf16> to vector<8x8xbf16>
    %163 = vector.extract_strided_slice %115 {offsets = [16, 0], sizes = [8, 8], strides = [1, 1]} : vector<32x8xbf16> to vector<8x8xbf16>
    %164 = vector.extract_strided_slice %117 {offsets = [0, 16], sizes = [8, 8], strides = [1, 1]} : vector<8x32xbf16> to vector<8x8xbf16>
    %cst_58 = arith.constant dense<0.000000e+00> : vector<8x8xf32>
    %165 = tpu.matmul %162, %163, %cst_58 {dimension_numbers = #tpu.dot_dimension_numbers<[1], [0], [0], [1], [0, 0, 1, 1], [], []>} : vector<8x8xbf16>, vector<8x8xbf16>, vector<8x8xf32> -> vector<8x8xf32>
    %166 = vector.broadcast %110 : vector<1x8xf32> to vector<8x8xf32>
    %167 = arith.mulf %165, %166 : vector<8x8xf32>
    %cst_59 = arith.constant dense<0xFF800000> : vector<8xf32>
    %168 = vector.multi_reduction <maximumf>, %167, %cst_59 [1] : vector<8x8xf32> to vector<8xf32>
    %169 = vector.shape_cast %168 : vector<8xf32> to vector<8x1xf32>
    %170 = vector.broadcast %169 : vector<8x1xf32> to vector<8x8xf32>
    %171 = arith.subf %167, %170 : vector<8x8xf32>
    %172 = math.exp %171 : vector<8x8xf32>
    %173 = vector.broadcast %110 : vector<1x8xf32> to vector<8x8xf32>
    %174 = arith.mulf %172, %173 : vector<8x8xf32>
    %cst_60 = arith.constant dense<0.000000e+00> : vector<8xf32>
    %175 = vector.multi_reduction <add>, %174, %cst_60 [1] : vector<8x8xf32> to vector<8xf32>
    %176 = vector.shape_cast %175 : vector<8xf32> to vector<8x1xf32>
    %cst_61 = arith.constant 9.99999982E-14 : f32
    %177 = vector.broadcast %cst_61 : f32 to vector<8x1xf32>
    %178 = arith.addf %176, %177 : vector<8x1xf32>
    %179 = tpu.reciprocal %178 : vector<8x1xf32> -> vector<8x1xf32>
    %180 = vector.broadcast %179 : vector<8x1xf32> to vector<8x8xf32>
    %181 = arith.mulf %174, %180 : vector<8x8xf32>
    %182 = arith.truncf %181 : vector<8x8xf32> to vector<8x8xbf16>
    %cst_62 = arith.constant dense<0.000000e+00> : vector<8x8xf32>
    %183 = tpu.matmul %182, %164, %cst_62 {dimension_numbers = #tpu.dot_dimension_numbers<[1], [0], [0], [1], [0, 0, 1, 1], [], []>} : vector<8x8xbf16>, vector<8x8xbf16>, vector<8x8xf32> -> vector<8x8xf32>
    %184 = vector.extract_strided_slice %113 {offsets = [0, 24], sizes = [8, 8], strides = [1, 1]} : vector<8x32xbf16> to vector<8x8xbf16>
    %185 = vector.extract_strided_slice %115 {offsets = [24, 0], sizes = [8, 8], strides = [1, 1]} : vector<32x8xbf16> to vector<8x8xbf16>
    %186 = vector.extract_strided_slice %117 {offsets = [0, 24], sizes = [8, 8], strides = [1, 1]} : vector<8x32xbf16> to vector<8x8xbf16>
    %cst_63 = arith.constant dense<0.000000e+00> : vector<8x8xf32>
    %187 = tpu.matmul %184, %185, %cst_63 {dimension_numbers = #tpu.dot_dimension_numbers<[1], [0], [0], [1], [0, 0, 1, 1], [], []>} : vector<8x8xbf16>, vector<8x8xbf16>, vector<8x8xf32> -> vector<8x8xf32>
    %188 = vector.broadcast %110 : vector<1x8xf32> to vector<8x8xf32>
    %189 = arith.mulf %187, %188 : vector<8x8xf32>
    %cst_64 = arith.constant dense<0xFF800000> : vector<8xf32>
    %190 = vector.multi_reduction <maximumf>, %189, %cst_64 [1] : vector<8x8xf32> to vector<8xf32>
    %191 = vector.shape_cast %190 : vector<8xf32> to vector<8x1xf32>
    %192 = vector.broadcast %191 : vector<8x1xf32> to vector<8x8xf32>
    %193 = arith.subf %189, %192 : vector<8x8xf32>
    %194 = math.exp %193 : vector<8x8xf32>
    %195 = vector.broadcast %110 : vector<1x8xf32> to vector<8x8xf32>
    %196 = arith.mulf %194, %195 : vector<8x8xf32>
    %cst_65 = arith.constant dense<0.000000e+00> : vector<8xf32>
    %197 = vector.multi_reduction <add>, %196, %cst_65 [1] : vector<8x8xf32> to vector<8xf32>
    %198 = vector.shape_cast %197 : vector<8xf32> to vector<8x1xf32>
    %cst_66 = arith.constant 9.99999982E-14 : f32
    %199 = vector.broadcast %cst_66 : f32 to vector<8x1xf32>
    %200 = arith.addf %198, %199 : vector<8x1xf32>
    %201 = tpu.reciprocal %200 : vector<8x1xf32> -> vector<8x1xf32>
    %202 = vector.broadcast %201 : vector<8x1xf32> to vector<8x8xf32>
    %203 = arith.mulf %196, %202 : vector<8x8xf32>
    %204 = arith.truncf %203 : vector<8x8xf32> to vector<8x8xbf16>
    %cst_67 = arith.constant dense<0.000000e+00> : vector<8x8xf32>
    %205 = tpu.matmul %204, %186, %cst_67 {dimension_numbers = #tpu.dot_dimension_numbers<[1], [0], [0], [1], [0, 0, 1, 1], [], []>} : vector<8x8xbf16>, vector<8x8xbf16>, vector<8x8xf32> -> vector<8x8xf32>
    %206 = tpu.concatenate %139, %161, %183, %205 in 1 : vector<8x8xf32>, vector<8x8xf32>, vector<8x8xf32>, vector<8x8xf32> -> vector<8x32xf32>
    %207 = vector.broadcast %112 : vector<8x1xf32> to vector<8x32xf32>
    %208 = arith.mulf %206, %207 : vector<8x32xf32>
    %209 = tpu.concatenate %108, %208 in 0 : vector<8x32xf32>, vector<8x32xf32> -> vector<16x32xf32>
    %210 = arith.truncf %209 : vector<16x32xf32> to vector<16x32xbf16>
    %c0_68 = arith.constant 0 : index
    %c0_69 = arith.constant 0 : index
    %211 = vector.load %arg10[%c0_68, %c0_69] : memref<32x32xbf16, #tpu.memory_space<vmem>>, vector<32x32xbf16>
    %cst_70 = arith.constant dense<0.000000e+00> : vector<16x32xf32>
    %212 = tpu.matmul %210, %211, %cst_70 {dimension_numbers = #tpu.dot_dimension_numbers<[1], [0], [0], [1], [0, 0, 1, 1], [], []>} : vector<16x32xbf16>, vector<32x32xbf16>, vector<16x32xf32> -> vector<16x32xf32>
    %213 = vector.shape_cast %212 : vector<16x32xf32> to vector<2x8x32xf32>
    %c0_71 = arith.constant 0 : index
    %c0_72 = arith.constant 0 : index
    %c0_73 = arith.constant 0 : index
    %214 = vector.load %arg11[%c0_71, %c0_72, %c0_73] : memref<2x8x32xf32, #tpu.memory_space<vmem>>, vector<2x8x32xf32>
    tpu.vector_store %arg11[%c0_71, %c0_72, %c0_73], %213 {strides = array<i32>} : memref<2x8x32xf32, #tpu.memory_space<vmem>>, vector<2x8x32xf32>,
    return
  }
  func.func @transform_0(%arg0: i32, %arg1: i32) -> (i32, i32, i32) {
    %c0_i32 = arith.constant 0 : i32
    %c0_i32_0 = arith.constant 0 : i32
    return %arg0, %arg1, %c0_i32 : i32, i32, i32
  }
  func.func @transform_1(%arg0: i32, %arg1: i32) -> (i32, i32, i32) {
    %c0_i32 = arith.constant 0 : i32
    %c0_i32_0 = arith.constant 0 : i32
    return %arg0, %arg1, %c0_i32 : i32, i32, i32
  }
  func.func @transform_2(%arg0: i32, %arg1: i32) -> (i32, i32, i32) {
    %c0_i32 = arith.constant 0 : i32
    %c0_i32_0 = arith.constant 0 : i32
    %c0_i32_1 = arith.constant 0 : i32
    return %arg0, %c0_i32, %c0_i32_0 : i32, i32, i32
  }
  func.func @transform_3(%arg0: i32, %arg1: i32) -> (i32, i32, i32) {
    %c0_i32 = arith.constant 0 : i32
    %c0_i32_0 = arith.constant 0 : i32
    %c0_i32_1 = arith.constant 0 : i32
    return %arg0, %c0_i32, %c0_i32_0 : i32, i32, i32
  }
  func.func @transform_4(%arg0: i32, %arg1: i32) -> (i32, i32, i32) {
    %c0_i32 = arith.constant 0 : i32
    %c0_i32_0 = arith.constant 0 : i32
    %c0_i32_1 = arith.constant 0 : i32
    return %arg0, %c0_i32, %c0_i32_0 : i32, i32, i32
  }
  func.func @transform_5(%arg0: i32, %arg1: i32) -> (i32, i32) {
    %c0_i32 = arith.constant 0 : i32
    %c0_i32_0 = arith.constant 0 : i32
    %c0_i32_1 = arith.constant 0 : i32
    return %c0_i32, %c0_i32_0 : i32, i32
  }
  func.func @transform_6(%arg0: i32, %arg1: i32) -> (i32, i32) {
    %c0_i32 = arith.constant 0 : i32
    %c0_i32_0 = arith.constant 0 : i32
    %c0_i32_1 = arith.constant 0 : i32
    return %c0_i32, %c0_i32_0 : i32, i32
  }
  func.func @transform_7(%arg0: i32, %arg1: i32) -> (i32, i32) {
    %c0_i32 = arith.constant 0 : i32
    %c0_i32_0 = arith.constant 0 : i32
    %c0_i32_1 = arith.constant 0 : i32
    return %c0_i32, %c0_i32_0 : i32, i32
  }
  func.func @transform_8(%arg0: i32, %arg1: i32) -> (i32, i32) {
    %c0_i32 = arith.constant 0 : i32
    %c0_i32_0 = arith.constant 0 : i32
    %c0_i32_1 = arith.constant 0 : i32
    return %c0_i32, %c0_i32_0 : i32, i32
  }
  func.func @transform_9(%arg0: i32, %arg1: i32) -> (i32, i32, i32) {
    %c0_i32 = arith.constant 0 : i32
    %c0_i32_0 = arith.constant 0 : i32
    return %arg0, %arg1, %c0_i32 : i32, i32, i32
  }
}

</mosaic_0001>

<bundles_post_ra>
// kernel: tpu_custom_call.1
= control target key start
LH: loop header
LB: loop body
LE: loop exit
PB: predicated region body
PF: predicated region fallthrough
CT: control target
= control target key end

     0   :  { %14 = vsyncpa [#allocation5], 0  ;;  %s2399_s0 = inlined_call_operand.hbm [shape: f32[2,8,16], index: 0, kind: input, shape index: {}]   ;;  %s2400_s1 = inlined_call_operand.hbm [shape: f32[2,8,1], index: 1, kind: input, shape index: {}]   ;;  %s2401_s2 = inlined_call_operand.hbm [shape: f32[2,8,16], index: 2, kind: input, shape index: {}]   ;;  %s2402_s3 = inlined_call_operand.hbm [shape: f32[2,1,8], index: 3, kind: input, shape index: {}]   ;;  %s2403_s4 = inlined_call_operand.hbm [shape: f32[2,8,16], index: 4, kind: input, shape index: {}]   ;;  %s2404_s5 = inlined_call_operand.hbm [shape: bf16[16,32], index: 5, kind: input, shape index: {}]   ;;  %s2405_s6 = inlined_call_operand.hbm [shape: bf16[16,32], index: 6, kind: input, shape index: {}]   ;;  %s2406_s7 = inlined_call_operand.hbm [shape: bf16[16,32], index: 7, kind: input, shape index: {}]   ;;  %s2407_s8 = inlined_call_operand.hbm [shape: bf16[32,32], index: 8, kind: input, shape index: {}]   ;;  %s2408_s9 = inlined_call_operand.hbm [shape: f32[2,8,32], index: 9, kind: output, shape index: {}]  }
   0x1   :  { %15 = vsyncpa [#allocation8], 0 }
   0x2   :  { %16 = vsyncpa [#allocation11], 0 }
   0x3   :  { %17 = vsyncpa [#allocation14], 0 }
   0x4   :  { %18 = vsyncpa [#allocation17], 0 }
   0x5   :  { %19 = vsyncpa [#allocation6], 0  ;;  %s1968_s30 = smov [#allocation7]   ;;  %s1969_s11 = smov [#allocation10]  }
   0x6   :  { %s37_s10 = sshll.u32 %s1968_s30, 4  ;;  %s61_s12 = sshll.u32 %s1969_s11, 4  ;;  %s38_s10 = int_to_ptr.vmem [resolvable:$true] %s37_s10  ;;  %s2041_s12 = int_to_ptr.vmem [resolvable:$true] %s61_s12 }
   0x7   :  { %s1736_s15 = scalar_lea.hbm %s2400_s1, 256 }
   0x8   :  { %p1737_p0 = scmp.ne.s32.totalorder %s2400_s1, %s1736_s15  ;;  %p1740_p1 = scmp.lt.u32.totalorder %s1736_s15, %s2400_s1 }
   0xa   :  { %p1742_p2 = pnand %p1740_p1, %p1737_p0 }
   0xc   :  { %1745 = shalt.err (!%p1742_p2)
}
   0xd   :  { %s1746_s20 = scalar_lea.vmem %s38_s10, 256  ;;  %p1751_p4 = scmp.lt.s32.totalorder %s38_s10, %s38_s10 }
   0xe   :  { %p1747_p3 = scmp.ne.s32.totalorder %s38_s10, %s1746_s20  ;;  %p1752_p5 = scmp.lt.s32.totalorder %s1746_s20, %s1746_s20 }
  0x10   :  { %p1753_p6 = por %p1752_p5, %p1751_p4 }
  0x12   :  { %p1754_p7 = pnand %p1753_p6, %p1747_p3 }
  0x14   :  { %1757 = shalt.err (!%p1754_p7)
}
  0x15   :  { %s1970_s21 = smov 128   ;;  %s1971_s22 = smov 8  }
  0x16   :  { %43 = dma.hbm_to_vmem [thread:$0]  %s2400_s1, 256, %s38_s10, [#allocation8], %s1970_s21, %s1970_s21, %s1971_s22  }
  0x17   :  { %s1758_s27 = scalar_lea.hbm %s2402_s3, 32 }
  0x18   :  { %p1759_p8 = scmp.ne.s32.totalorder %s2402_s3, %s1758_s27  ;;  %p1762_p9 = scmp.lt.u32.totalorder %s1758_s27, %s2402_s3 }
  0x1a   :  { %p1764_p10 = pnand %p1762_p9, %p1759_p8 }
  0x1c   :  { %1767 = shalt.err (!%p1764_p10)
}
  0x1d   :  { %s1768_s13 = scalar_lea.vmem %s2041_s12, 32  ;;  %p1773_p12 = scmp.lt.s32.totalorder %s2041_s12, %s2041_s12 }
  0x1e   :  { %p1769_p11 = scmp.ne.s32.totalorder %s2041_s12, %s1768_s13  ;;  %p1774_p13 = scmp.lt.s32.totalorder %s1768_s13, %s1768_s13 }
  0x20   :  { %p1775_p0 = por %p1774_p13, %p1773_p12 }
  0x22   :  { %p1776_p1 = pnand %p1775_p0, %p1769_p11 }
  0x24   :  { %1779 = shalt.err (!%p1776_p1)
}
  0x25   :  { %s1972_s1 = smov 16   ;;  %s1973_s10 = smov 1  }
  0x26   :  { %67 = dma.hbm_to_vmem [thread:$0]  %s2402_s3, 32, %s2041_s12, [#allocation11], %s1972_s1, %s1972_s1, %s1973_s10  }
  0x27   :  { %s1974_s16 = smov [#allocation13]   ;;  %s1780_s20 = scalar_lea.hbm %s2404_s5, 128 }
  0x28   :  { %s85_s17 = sshll.u32 %s1974_s16, 4  ;;  %p1781_p2 = scmp.ne.s32.totalorder %s2404_s5, %s1780_s20  ;;  %s86_s17 = int_to_ptr.vmem [resolvable:$true] %s85_s17 }
  0x29   :  { %p1784_p3 = scmp.lt.u32.totalorder %s1780_s20, %s2404_s5 }
  0x2b   :  { %p1786_p4 = pnand %p1784_p3, %p1781_p2 }
  0x2d   :  { %1789 = shalt.err (!%p1786_p4)
}
  0x2e   :  { %s1790_s27 = scalar_lea.vmem %s86_s17, 128  ;;  %p1795_p6 = scmp.lt.s32.totalorder %s86_s17, %s86_s17 }
  0x2f   :  { %p1791_p5 = scmp.ne.s32.totalorder %s86_s17, %s1790_s27  ;;  %p1796_p7 = scmp.lt.s32.totalorder %s1790_s27, %s1790_s27 }
  0x31   :  { %p1797_p8 = por %p1796_p7, %p1795_p6 }
  0x33   :  { %p1798_p9 = pnand %p1797_p8, %p1791_p5 }
  0x35   :  { %1801 = shalt.err (!%p1798_p9)
}
  0x36   :  { %s1975_s3 = smov 64   ;;  %s1976_s12 = smov 4  }
  0x37   :  { %91 = dma.hbm_to_vmem [thread:$0]  %s2404_s5, 128, %s86_s17, [#allocation14], %s1975_s3, %s1975_s3, %s1976_s12  }
  0x38   :  { %s1977_s30 = smov [#allocation16]   ;;  %s1978_s13 = smov [#allocation4]  }
  0x39   :  { %s109_s11 = sshll.u32 %s1977_s30, 4  ;;  %s25_s10 = sshll.u32 %s1978_s13, 4  ;;  %s110_s11 = int_to_ptr.vmem [resolvable:$true] %s109_s11  ;;  %s26_s10 = int_to_ptr.vmem [resolvable:$true] %s25_s10 }
  0x3a   :  { %s1802_s16 = scalar_lea.hbm %s2406_s7, 128 }
  0x3b   :  { %p1803_p10 = scmp.ne.s32.totalorder %s2406_s7, %s1802_s16  ;;  %p1806_p11 = scmp.lt.u32.totalorder %s1802_s16, %s2406_s7 }
  0x3d   :  { %p1808_p12 = pnand %p1806_p11, %p1803_p10 }
  0x3f   :  { %1811 = shalt.err (!%p1808_p12)
}
  0x40   :  { %s1812_s5 = scalar_lea.vmem %s110_s11, 128  ;;  %p1817_p0 = scmp.lt.s32.totalorder %s110_s11, %s110_s11 }
  0x41   :  { %p1813_p13 = scmp.ne.s32.totalorder %s110_s11, %s1812_s5  ;;  %p1818_p1 = scmp.lt.s32.totalorder %s1812_s5, %s1812_s5 }
  0x43   :  { %p1819_p2 = por %p1818_p1, %p1817_p0 }
  0x45   :  { %p1820_p3 = pnand %p1819_p2, %p1813_p13 }
  0x47   :  { %1823 = shalt.err (!%p1820_p3)
}
  0x48   :  { %115 = dma.hbm_to_vmem [thread:$0]  %s2406_s7, 128, %s110_s11, [#allocation17], %s1975_s3, %s1975_s3, %s1976_s12  }
  0x49   :  { %s1824_s27 = scalar_lea.hbm %s2399_s0, 256 }
  0x4a   :  { %p1825_p4 = scmp.ne.s32.totalorder %s2399_s0, %s1824_s27  ;;  %p1828_p5 = scmp.lt.u32.totalorder %s1824_s27, %s2399_s0 }
  0x4c   :  { %p1830_p6 = pnand %p1828_p5, %p1825_p4 }
  0x4e   :  { %1833 = shalt.err (!%p1830_p6)
}
  0x4f   :  { %s1834_s14 = scalar_lea.vmem %s26_s10, 256  ;;  %p1839_p8 = scmp.lt.s32.totalorder %s26_s10, %s26_s10 }
  0x50   :  { %p1835_p7 = scmp.ne.s32.totalorder %s26_s10, %s1834_s14  ;;  %p1840_p9 = scmp.lt.s32.totalorder %s1834_s14, %s1834_s14 }
  0x52   :  { %p1841_p10 = por %p1840_p9, %p1839_p8 }
  0x54   :  { %p1842_p11 = pnand %p1841_p10, %p1835_p7 }
  0x56   :  { %1845 = shalt.err (!%p1842_p11)
}
  0x57   :  { %31 = dma.hbm_to_vmem [thread:$0]  %s2399_s0, 256, %s26_s10, [#allocation5], %s1970_s21, %s1970_s21, %s1971_s22  }
  0x58   :  { %s1979_s15 = smov [#allocation9]   ;;  %s1980_s18 = smov [#allocation12]  }
  0x59   :  { %s49_s16 = sshll.u32 %s1979_s15, 4  ;;  %s73_s19 = sshll.u32 %s1980_s18, 4  ;;  %s50_s16 = int_to_ptr.vmem [resolvable:$true] %s49_s16  ;;  %s74_s19 = int_to_ptr.vmem [resolvable:$true] %s73_s19 }
  0x5a   :  { %s1846_s5 = scalar_lea.hbm %s2401_s2, 256 }
  0x5b   :  { %p1847_p12 = scmp.ne.s32.totalorder %s2401_s2, %s1846_s5  ;;  %p1850_p13 = scmp.lt.u32.totalorder %s1846_s5, %s2401_s2 }
  0x5d   :  { %p1852_p0 = pnand %p1850_p13, %p1847_p12 }
  0x5f   :  { %1855 = shalt.err (!%p1852_p0)
}
  0x60   :  { %s1856_s0 = scalar_lea.vmem %s50_s16, 256  ;;  %p1861_p2 = scmp.lt.s32.totalorder %s50_s16, %s50_s16 }
  0x61   :  { %p1857_p1 = scmp.ne.s32.totalorder %s50_s16, %s1856_s0  ;;  %p1862_p3 = scmp.lt.s32.totalorder %s1856_s0, %s1856_s0 }
  0x63   :  { %p1863_p4 = por %p1862_p3, %p1861_p2 }
  0x65   :  { %p1864_p5 = pnand %p1863_p4, %p1857_p1 }
  0x67   :  { %1867 = shalt.err (!%p1864_p5)
}
  0x68   :  { %55 = dma.hbm_to_vmem [thread:$0]  %s2401_s2, 256, %s50_s16, [#allocation8], %s1970_s21, %s1970_s21, %s1971_s22  }
  0x69   :  { %s1868_s30 = scalar_lea.hbm %s2403_s4, 256 }
  0x6a   :  { %p1869_p6 = scmp.ne.s32.totalorder %s2403_s4, %s1868_s30  ;;  %p1872_p7 = scmp.lt.u32.totalorder %s1868_s30, %s2403_s4 }
  0x6c   :  { %p1874_p8 = pnand %p1872_p7, %p1869_p6 }
  0x6e   :  { %1877 = shalt.err (!%p1874_p8)
}
  0x6f   :  { %s1878_s15 = scalar_lea.vmem %s74_s19, 256  ;;  %p1883_p10 = scmp.lt.s32.totalorder %s74_s19, %s74_s19 }
  0x70   :  { %p1879_p9 = scmp.ne.s32.totalorder %s74_s19, %s1878_s15  ;;  %p1884_p11 = scmp.lt.s32.totalorder %s1878_s15, %s1878_s15 }
  0x72   :  { %p1885_p12 = por %p1884_p11, %p1883_p10 }
  0x74   :  { %p1886_p13 = pnand %p1885_p12, %p1879_p9 }
  0x76   :  { %1889 = shalt.err (!%p1886_p13)
}
  0x77   :  { %79 = dma.hbm_to_vmem [thread:$0]  %s2403_s4, 256, %s74_s19, [#allocation11], %s1970_s21, %s1970_s21, %s1971_s22  }
  0x78   :  { %s1981_s18 = smov [#allocation15]   ;;  %s1982_s23 = smov [#allocation18]  }
  0x79   :  { %s97_s20 = sshll.u32 %s1981_s18, 4  ;;  %s121_s5 = sshll.u32 %s1982_s23, 4  ;;  %s98_s20 = int_to_ptr.vmem [resolvable:$true] %s97_s20  ;;  %s122_s5 = int_to_ptr.vmem [resolvable:$true] %s121_s5 }
  0x7a   :  { %s1890_s25 = scalar_lea.hbm %s2405_s6, 128 }
  0x7b   :  { %p1891_p0 = scmp.ne.s32.totalorder %s2405_s6, %s1890_s25  ;;  %p1894_p1 = scmp.lt.u32.totalorder %s1890_s25, %s2405_s6 }
  0x7d   :  { %p1896_p2 = pnand %p1894_p1, %p1891_p0 }
  0x7f   :  { %1899 = shalt.err (!%p1896_p2)
}
  0x80   :  { %s1900_s4 = scalar_lea.vmem %s98_s20, 128  ;;  %p1905_p4 = scmp.lt.s32.totalorder %s98_s20, %s98_s20 }
  0x81   :  { %p1901_p3 = scmp.ne.s32.totalorder %s98_s20, %s1900_s4  ;;  %p1906_p5 = scmp.lt.s32.totalorder %s1900_s4, %s1900_s4 }
  0x83   :  { %p1907_p6 = por %p1906_p5, %p1905_p4 }
  0x85   :  { %p1908_p7 = pnand %p1907_p6, %p1901_p3 }
  0x87   :  { %1911 = shalt.err (!%p1908_p7)
}
  0x88   :  { %103 = dma.hbm_to_vmem [thread:$0]  %s2405_s6, 128, %s98_s20, [#allocation14], %s1975_s3, %s1975_s3, %s1976_s12  }
  0x89   :  { %s1912_s13 = scalar_lea.hbm %s2407_s8, 256 }
  0x8a   :  { %p1913_p8 = scmp.ne.s32.totalorder %s2407_s8, %s1912_s13  ;;  %p1916_p9 = scmp.lt.u32.totalorder %s1912_s13, %s2407_s8 }
  0x8c   :  { %p1918_p10 = pnand %p1916_p9, %p1913_p8 }
  0x8e   :  { %1921 = shalt.err (!%p1918_p10)
}
  0x8f   :  { %s1922_s2 = scalar_lea.vmem %s122_s5, 256  ;;  %p1927_p12 = scmp.lt.s32.totalorder %s122_s5, %s122_s5 }
  0x90   :  { %p1923_p11 = scmp.ne.s32.totalorder %s122_s5, %s1922_s2  ;;  %p1928_p13 = scmp.lt.s32.totalorder %s1922_s2, %s1922_s2 }
  0x92   :  { %p1929_p0 = por %p1928_p13, %p1927_p12 }
  0x94   :  { %p1930_p1 = pnand %p1929_p0, %p1923_p11 }
  0x96   :  { %1933 = shalt.err (!%p1930_p1)
}
  0x97   :  { %127 = dma.hbm_to_vmem [thread:$0]  %s2407_s8, 256, %s122_s5, [#allocation17], %s1975_s3, %s1975_s3, %s1976_s12  }
  0x98   :  { %1956 = dma.done.wait [#allocation5], 256  }
  0x99   :  { %1957 = vsyncadd [#allocation5], 4294967040 }
  0x9a   :  { %1958 = dma.done.wait [#allocation8], 512  }
  0x9b   :  { %1959 = vsyncadd [#allocation8], 4294966784 }
  0x9c   :  { %1960 = dma.done.wait [#allocation11], 288  }
  0x9d   :  { %1961 = vsyncadd [#allocation11], 4294967008 }
  0x9e   :  { %1962 = dma.done.wait [#allocation14], 256  }
  0x9f   :  { %1963 = vsyncadd [#allocation14], 4294967040 }
  0xa0   :  { %1964 = dma.done.wait [#allocation17], 384  }
  0xa1   :  { %1965 = vsyncadd [#allocation17], 4294966912  ;;  %v1983_v0 = vmov 0.0   ;;  %vm1984_vm0 = vmmov 0   ;;  %v1697_v1 = vld [vmem:[#allocation15] sm:$0xff]   ;;  %v160_v2 = vld [vmem:[#allocation9] sm:$0xff] }
  0xa2   :  { %1528 = vmatprep.subr.bf16.mxu0 %v1983_v0  ;;  %1530 = vmatprep.mubr.msk.bf16.mxu0 %vm1984_vm0, %v1983_v0  ;;  %v161_v3 = vld [vmem:[#allocation9 + $0x8] sm:$0xff]  ;;  %vm174_vm1 = vcmask 130048   ;;  %v349_v6 = vld [vmem:[#allocation4] sm:$0xff]  ;;  %s1985_s8 = smov 112   ;;  %v1699_v19 = vld [vmem:[#allocation16] sm:$0xff]   ;;  %s1986_s3 = smov 104  }
  0xa3   :  { %1534 = vmatprep.subr.bf16.mxu1 %v1983_v0  ;;  %1536 = vmatprep.mubr.msk.bf16.mxu1 %vm1984_vm0, %v1983_v0  ;;  %v162_v4 = vpack.c.bf16 %v161_v3, %v160_v2  ;;  %v1698_v5 = vld [vmem:[#allocation13] sm:$0xff]   ;;  %v163_v20 = vld [vmem:[#allocation12] sm:$0xff]  ;;  %v164_v21 = vld [vmem:[#allocation12 + $0x8] sm:$0xff]  ;;  %s1987_s12 = smov 120   ;;  %vm339_vm2 = vcmask 64512   ;;  %vm415_vm3 = vcmask 1043456  }
  0xa4   :  { %1529 = vmatpush3.bf16.msra.mxu0 %v1697_v1  ;;  %v350_v7 = vld [vmem:[#allocation4 + $0x8] sm:$0xff]  ;;  %1535 = vmatpush3.bf16.msra.mxu1 %v1699_v19  ;;  %v165_v22 = vpack.c.bf16 %v164_v21, %v163_v20  ;;  %vm346_vm4 = vcmask 257024   ;;  %s1989_s18 = smov 24   ;;  %vm881_vm5 = vcmask 195584   ;;  %vm1390_vm6 = vcmask 261120  }
  0xa5   :  { %1540 = vmatprep.subr.bf16.mxu0 %v1983_v0  ;;  %v351_v8 = vpack.c.bf16 %v350_v7, %v349_v6  ;;  %1546 = vmatprep.subr.bf16.mxu1 %v1983_v0  ;;  %v2252_v7 = vld [vmem:[#allocation10] ss:$0 sm:$0xff] }
  0xa7   :  { %1531 = vmatmul.mubr.msk.bf16.vlgmr.msra.gmra.mrb[0].mxu0 %vm174_vm1, %v162_v4  ;;  %1537 = vmatmul.mubr.msk.bf16.vlgmr.msra.gmra.mrb[0].mxu1 %vm174_vm1, %v165_v22 }
  0xa8   :  { %1541 = vmatpush3.bf16.msra.mxu0 %v1698_v5  ;;  %1542 = vmatprep.mubr.msk.bf16.mxu0 %vm1984_vm0, %v1983_v0 }
  0xa9   :  { %1552 = vmatprep.subr.bf16.mxu0 %v1983_v0  ;;  %1548 = vmatprep.mubr.msk.bf16.mxu1 %vm1984_vm0, %v1983_v0 }
  0xaf   :  { %1543 = vmatmul.mubr.msk.bf16.vlgmr.msra.gmra.mrb[4].mxu0 %vm174_vm1, %v351_v8 }
  0xb0   :  { %1554 = vmatprep.mubr.msk.bf16.mxu0 %vm1984_vm0, %v1983_v0 }
 0x17a   :  { %v212_v9 = vpop.f32.mrb[0].mxu0  ;;  %v264_v62 = vpop.f32.mrb[0].mxu1 }
 0x17b   :  { %v1532_v10 = vpop.f32.mrb[1].mxu0  ;;  %v344_v63 = vpack.c.bf16 %v264_v62, %v264_v62  ;;  %v1538_v1 = vpop.f32.mrb[1].mxu1 }
 0x17c   :  { %v215_v11 = vpop.f32.mrb[2].mxu0  ;;  %v267_v2 = vpop.f32.mrb[2].mxu1 }
 0x17d   :  { %v1533_v12 = vpop.f32.mrb[3].mxu0  ;;  %v1673_v13 = vpack.i.bf16 %v215_v11, %v212_v9  ;;  %347 = vst.msk [vmem:[#allocation3] sm:$0xf] %vm346_vm4, %v344_v63  ;;  %v345_v3 = vpack.c.bf16 %v267_v2, %v267_v2  ;;  %v1539_v4 = vpop.f32.mrb[3].mxu1 }
 0x17f   :  { %1674 = vxpose.xlu0.b32.start.end [1/1] (short) (narrow) %v1673_v13, 32  ;;  %348 = vst.msk [vmem:[#allocation3 + $0x4] sm:$0xf] %vm346_vm4, %v345_v3 }
 0x182   :  { %v398_v14 = vpop.f32.mrb[4].mxu0 }
 0x183   :  { %v1544_v15 = vpop.f32.mrb[5].mxu0 }
 0x184   :  { %v401_v16 = vpop.f32.mrb[6].mxu0  ;;  %v410_v5 = vld [vmem:[#allocation3] sm:$0xf] }
 0x185   :  { %v405_v17 = vpack.c.bf16 %v401_v16, %v398_v14  ;;  %v1545_v18 = vpop.f32.mrb[7].mxu0  ;;  %v484_v6 = vsel %vm415_vm3, %v410_v5, 0 }
 0x186   :  { %1553 = vmatpush3.bf16.msra.mxu0 %v484_v6 }
 0x187   :  { %643 = vrot.lane.b32.xlu1 %v405_v17, %s1985_s8  ;;  %v898_v23 = vrot.slane %v405_v17, 4  ;;  %1564 = vmatprep.subr.bf16.mxu0 %v1983_v0 }
 0x18b   :  { %754 = vrot.lane.b32.xlu1 %v405_v17, %s1986_s3 }
 0x18f   :  { %1012 = vrot.lane.b32.xlu1 %v898_v23, %s1987_s12 }
 0x193   :  { %1128 = vrot.lane.b32.xlu1 %v898_v23, %s1985_s8 }
 0x197   :  { %1239 = vrot.lane.b32.xlu1 %v898_v23, %s1986_s3 }
 0x1b4   :  { %527 = vrot.lane.b32.xlu0 %v405_v17, %s1987_s12 }
 0x1f9   :  { %v644_v48 = vpop.permute.xlu1 %643 }
 0x1fd   :  { %v755_v51 = vpop.permute.xlu1 %754 }
 0x1ff   :  { %v1675_v24 = vpop.trf.xlu0 }
 0x200   :  { %v1679_v25 = vunpack.i.h.bf16 %v1675_v24  ;;  %v1676_v26 = vunpack.i.l.bf16 %v1675_v24 }
 0x201   :  { %v1013_v56 = vpop.permute.xlu1 %1012 }
 0x203   :  { %v1680_v27 = vpop.trf.xlu0 }
 0x204   :  { %v1684_v28 = vunpack.i.h.bf16 %v1680_v27  ;;  %v1681_v29 = vunpack.i.l.bf16 %v1680_v27 }
 0x205   :  { %v1129_v59 = vpop.permute.xlu1 %1128 }
 0x206   :  { %v335_v30 = vpack.c.bf16 %v1681_v29, %v1676_v26  ;;  %v337_v31 = vpack.c.bf16 %v1684_v28, %v1679_v25 }
 0x207   :  { %v1685_v32 = vpop.trf.xlu0 }
 0x208   :  { %340 = vst.msk [vmem:[#allocation2] sm:$0xff] %vm339_vm2, %v335_v30  ;;  %342 = vst.msk [vmem:[#allocation2 + $0x10] sm:$0xff] %vm339_vm2, %v337_v31  ;;  %v1689_v33 = vunpack.i.h.bf16 %v1685_v32  ;;  %v1686_v34 = vunpack.i.l.bf16 %v1685_v32  ;;  %v2262_v32 = vld [vmem:[#allocation10 + $0x1] ss:$0 sm:$0xff] }
 0x209   :  { %v1240_v61 = vpop.permute.xlu1 %1239 }
 0x20b   :  { %v1690_v35 = vpop.trf.xlu0 }
 0x20c   :  { %v1694_v36 = vunpack.i.h.bf16 %v1690_v35  ;;  %v1691_v37 = vunpack.i.l.bf16 %v1690_v35 }
 0x20e   :  { %v336_v38 = vpack.c.bf16 %v1691_v37, %v1686_v34  ;;  %v338_v39 = vpack.c.bf16 %v1694_v36, %v1689_v33 }
 0x20f   :  { %v408_v40 = vld [vmem:[#allocation2] sm:$0xff]  ;;  %v894_v50 = vld [vmem:[#allocation2 + $0x10] sm:$0xff] }
 0x210   :  { %v417_v41 = vsel %vm415_vm3, %v408_v40, 0  ;;  %341 = vst.msk [vmem:[#allocation2 + $0x8] sm:$0xff] %vm339_vm2, %v336_v38  ;;  %343 = vst.msk [vmem:[#allocation2 + $0x18] sm:$0xff] %vm339_vm2, %v338_v39  ;;  %v530_v42 = vrot.slane %v408_v40, 4  ;;  %v903_v52 = vsel %vm415_vm3, %v894_v50, 0  ;;  %v1015_v53 = vrot.slane %v894_v50, 4 }
 0x211   :  { %1547 = vmatpush3.bf16.msra.mxu1 %v417_v41  ;;  %v2266_v40 = vcombine.low %v410_v5, %v410_v5 }
 0x212   :  { %1558 = vmatprep.subr.bf16.mxu1 %v1983_v0  ;;  %v535_v43 = vsel %vm415_vm3, %v530_v42, 0  ;;  %v1020_v54 = vsel %vm415_vm3, %v1015_v53, 0 }
 0x214   :  { %1549 = vmatmul.mubr.msk.bf16.vlgmr.msra.gmra.mrb[4].mxu1 %vm339_vm2, %v405_v17 }
 0x215   :  { %1559 = vmatpush3.bf16.msra.mxu1 %v535_v43  ;;  %1560 = vmatprep.mubr.msk.bf16.mxu1 %vm1984_vm0, %v1983_v0 }
 0x216   :  { %1570 = vmatprep.subr.bf16.mxu1 %v1983_v0 }
 0x217   :  { %v409_v44 = vld [vmem:[#allocation2 + $0x8] sm:$0xff]  ;;  %v895_v55 = vld [vmem:[#allocation2 + $0x18] sm:$0xff] }
 0x218   :  { %v649_v45 = vsel %vm415_vm3, %v409_v44, 0  ;;  %v757_v47 = vrot.slane %v409_v44, 4  ;;  %v1134_v57 = vsel %vm415_vm3, %v895_v55, 0  ;;  %v1242_v58 = vrot.slane %v895_v55, 4 }
 0x21a   :  { %v762_v49 = vsel %vm415_vm3, %v757_v47, 0  ;;  %v1247_v60 = vsel %vm415_vm3, %v1242_v58, 0 }
 0x226   :  { %v528_v46 = vpop.permute.xlu0 %527 }
 0x227   :  { %1561 = vmatmul.mubr.msk.bf16.vlgmr.msra.gmra.mrb[8].mxu1 %vm339_vm2, %v528_v46 }
 0x228   :  { %1571 = vmatpush3.bf16.msra.mxu1 %v649_v45  ;;  %1572 = vmatprep.mubr.msk.bf16.mxu1 %vm1984_vm0, %v1983_v0 }
 0x229   :  { %1582 = vmatprep.subr.bf16.mxu1 %v1983_v0 }
 0x22f   :  { %1573 = vmatmul.mubr.msk.bf16.vlgmr.msra.gmra.mrb[12].mxu1 %vm339_vm2, %v644_v48 }
 0x230   :  { %1583 = vmatpush3.bf16.msra.mxu1 %v762_v49  ;;  %1584 = vmatprep.mubr.msk.bf16.mxu1 %vm1984_vm0, %v1983_v0 }
 0x231   :  { %1594 = vmatprep.subr.bf16.mxu1 %v1983_v0 }
 0x237   :  { %1585 = vmatmul.mubr.msk.bf16.vlgmr.msra.gmra.mrb[16].mxu1 %vm339_vm2, %v755_v51 }
 0x238   :  { %1595 = vmatpush3.bf16.msra.mxu1 %v903_v52  ;;  %1596 = vmatprep.mubr.msk.bf16.mxu1 %vm1984_vm0, %v1983_v0 }
 0x239   :  { %1606 = vmatprep.subr.bf16.mxu1 %v1983_v0 }
 0x23f   :  { %1597 = vmatmul.mubr.msk.bf16.vlgmr.msra.gmra.mrb[20].mxu1 %vm339_vm2, %v898_v23 }
 0x240   :  { %1607 = vmatpush3.bf16.msra.mxu1 %v1020_v54  ;;  %1608 = vmatprep.mubr.msk.bf16.mxu1 %vm1984_vm0, %v1983_v0 }
 0x241   :  { %1618 = vmatprep.subr.bf16.mxu1 %v1983_v0 }
 0x247   :  { %1609 = vmatmul.mubr.msk.bf16.vlgmr.msra.gmra.mrb[24].mxu1 %vm339_vm2, %v1013_v56 }
 0x248   :  { %1619 = vmatpush3.bf16.msra.mxu1 %v1134_v57  ;;  %1620 = vmatprep.mubr.msk.bf16.mxu1 %vm1984_vm0, %v1983_v0 }
 0x249   :  { %1630 = vmatprep.subr.bf16.mxu1 %v1983_v0 }
 0x24f   :  { %1621 = vmatmul.mubr.msk.bf16.vlgmr.msra.gmra.mrb[28].mxu1 %vm339_vm2, %v1129_v59 }
 0x250   :  { %1631 = vmatpush3.bf16.msra.mxu1 %v1247_v60  ;;  %1632 = vmatprep.mubr.msk.bf16.mxu1 %vm1984_vm0, %v1983_v0 }
 0x251   :  { %1642 = vmatprep.subr.bf16.mxu1 %v1983_v0 }
 0x257   :  { %1633 = vmatmul.mubr.msk.bf16.vlgmr.msra.gmra.mrb[32].mxu1 %vm339_vm2, %v1240_v61 }
 0x258   :  { %1646 = vmatprep.mubr.msk.bf16.mxu1 %vm1984_vm0, %v1983_v0 }
 0x2e7   :  { %v453_v8 = vpop.f32.mrb[4].mxu1 }
 0x2e8   :  { %v465_v9 = vmul.f32 %v2252_v7, %v453_v8  ;;  %v1550_v10 = vpop.f32.mrb[5].mxu1 }
 0x2e9   :  { %v456_v11 = vpop.f32.mrb[6].mxu1 }
 0x2ea   :  { %v1551_v12 = vpop.f32.mrb[7].mxu1  ;;  %v466_v13 = vsel %vm339_vm2, %v465_v9, -inf }
 0x2eb   :  { %467 = vmax.xlane.f32.xlu1 %v466_v13 }
 0x2fa   :  { %v571_v14 = vpop.f32.mrb[8].mxu1 }
 0x2fb   :  { %v577_v15 = vmul.f32 %v2252_v7, %v571_v14  ;;  %v1562_v16 = vpop.f32.mrb[9].mxu1 }
 0x2fc   :  { %v574_v17 = vpop.f32.mrb[10].mxu1 }
 0x2fd   :  { %v1563_v18 = vpop.f32.mrb[11].mxu1  ;;  %v578_v19 = vsel %vm339_vm2, %v577_v15, -inf }
 0x2fe   :  { %579 = vmax.xlane.f32.xlu1 %v578_v19 }
 0x302   :  { %v685_v20 = vpop.f32.mrb[12].mxu1 }
 0x303   :  { %v691_v21 = vmul.f32 %v2252_v7, %v685_v20  ;;  %v1574_v22 = vpop.f32.mrb[13].mxu1 }
 0x304   :  { %v688_v23 = vpop.f32.mrb[14].mxu1 }
 0x305   :  { %v1575_v24 = vpop.f32.mrb[15].mxu1  ;;  %v692_v25 = vsel %vm339_vm2, %v691_v21, -inf }
 0x306   :  { %693 = vmax.xlane.f32.xlu0 %v692_v25 }
 0x30a   :  { %v798_v26 = vpop.f32.mrb[16].mxu1 }
 0x30b   :  { %v804_v27 = vmul.f32 %v2252_v7, %v798_v26  ;;  %v1586_v28 = vpop.f32.mrb[17].mxu1  ;;  %v2306_v26 = vld [vmem:[#allocation3 + $0x4] sm:$0xf] }
 0x30c   :  { %v801_v29 = vpop.f32.mrb[18].mxu1 }
 0x30d   :  { %v1587_v30 = vpop.f32.mrb[19].mxu1  ;;  %v805_v31 = vsel %vm339_vm2, %v804_v27, -inf }
 0x30e   :  { %806 = vmax.xlane.f32.xlu1 %v805_v31 }
 0x312   :  { %v939_v33 = vpop.f32.mrb[20].mxu1 }
 0x313   :  { %v951_v34 = vmul.f32 %v2262_v32, %v939_v33  ;;  %v1598_v35 = vpop.f32.mrb[21].mxu1 }
 0x314   :  { %v942_v36 = vpop.f32.mrb[22].mxu1 }
 0x315   :  { %v1599_v37 = vpop.f32.mrb[23].mxu1  ;;  %v952_v38 = vsel %vm339_vm2, %v951_v34, -inf }
 0x316   :  { %953 = vmax.xlane.f32.xlu1 %v952_v38 }
 0x31a   :  { %v1056_v39 = vpop.f32.mrb[24].mxu1 }
 0x31b   :  { %v2269_v41 = vmul.f32 %v2262_v32, %v1056_v39  ;;  %v1610_v42 = vpop.f32.mrb[25].mxu1 }
 0x31c   :  { %706 = vrot.lane.b32.xlu0 %v2266_v40, %s1985_s8  ;;  %v1059_v43 = vpop.f32.mrb[26].mxu1 }
 0x31d   :  { %v1611_v44 = vpop.f32.mrb[27].mxu1  ;;  %v1063_v45 = vsel %vm339_vm2, %v2269_v41, -inf }
 0x31e   :  { %1064 = vmax.xlane.f32.xlu1 %v1063_v45 }
 0x322   :  { %v1170_v46 = vpop.f32.mrb[28].mxu1 }
 0x323   :  { %v1176_v47 = vmul.f32 %v2262_v32, %v1170_v46  ;;  %v1622_v48 = vpop.f32.mrb[29].mxu1 }
 0x324   :  { %v1173_v49 = vpop.f32.mrb[30].mxu1 }
 0x325   :  { %v1623_v50 = vpop.f32.mrb[31].mxu1  ;;  %v1177_v51 = vsel %vm339_vm2, %v1176_v47, -inf  ;;  %v407_v49 = vld [vmem:[#allocation7] sm:$0xff] }
 0x326   :  { %1178 = vmax.xlane.f32.xlu1 %v1177_v51  ;;  %v1988_v50 = vmov 0  }
 0x327   :  { %1695 = vset.pattern.permute.xlu1 %v1988_v50  ;;  %1696 = vset.pattern.permute.xlu0 %v1988_v50 }
 0x32a   :  { %v1283_v52 = vpop.f32.mrb[32].mxu1 }
 0x32b   :  { %v1289_v53 = vmul.f32 %v2262_v32, %v1283_v52  ;;  %v1634_v54 = vpop.f32.mrb[33].mxu1 }
 0x32c   :  { %v1286_v55 = vpop.f32.mrb[34].mxu1 }
 0x32d   :  { %v1635_v56 = vpop.f32.mrb[35].mxu1  ;;  %v1290_v57 = vsel %vm339_vm2, %v1289_v53, -inf }
 0x32e   :  { %1291 = vmax.xlane.f32.xlu1 %v1290_v57 }
 0x33f   :  { %595 = vrot.lane.b32.xlu1 %v2266_v40, %s1987_s12 }
 0x378   :  { %v468_v58 = vpop.xlane.xlu1 %467 }
 0x379   :  { %v469_v59 = vsub.f32 %v465_v9, %v468_v58 }
 0x37b   :  { %v470_v60 = vmul.f32 1.442695, %v469_v59 }
 0x37d   :  { %1704 = vpow2.f32 %v470_v60 }
 0x387   :  { %v1705_v61 = vpop.eup %1704 }
 0x388   :  { %v2282_v62 = vmul.f32 %v1705_v61, %v2252_v7 }
 0x38a   :  { %v473_v63 = vsel %vm339_vm2, %v2282_v62, 0.0 }
 0x38b   :  { %v580_v1 = vpop.xlane.xlu1 %579  ;;  %474 = vadd.xlane.f32.xlu1 %v473_v63 }
 0x38c   :  { %v581_v2 = vsub.f32 %v577_v15, %v580_v1 }
 0x38e   :  { %v582_v3 = vmul.f32 1.442695, %v581_v2 }
 0x390   :  { %1706 = vpow2.f32 %v582_v3 }
 0x393   :  { %v694_v4 = vpop.xlane.xlu0 %693 }
 0x394   :  { %v695_v5 = vsub.f32 %v691_v21, %v694_v4 }
 0x396   :  { %v696_v6 = vmul.f32 1.442695, %v695_v5 }
 0x397   :  { %v707_v56 = vpop.permute.xlu0 %706 }
 0x398   :  { %1708 = vpow2.f32 %v696_v6  ;;  %v712_v1 = vsel %vm415_vm3, %v707_v56, 0 }
 0x39a   :  { %v1707_v8 = vpop.eup %1706 }
 0x39b   :  { %v807_v9 = vpop.xlane.xlu1 %806  ;;  %v2287_v10 = vmul.f32 %v1707_v8, %v2252_v7 }
 0x39c   :  { %v808_v11 = vsub.f32 %v804_v27, %v807_v9  ;;  %v1478_v27 = vcombine.low %v2306_v26, %v2306_v26 }
 0x39d   :  { %v585_v12 = vsel %vm339_vm2, %v2287_v10, 0.0 }
 0x39e   :  { %v809_v13 = vmul.f32 1.442695, %v808_v11  ;;  %586 = vadd.xlane.f32.xlu1 %v585_v12 }
 0x3a0   :  { %1710 = vpow2.f32 %v809_v13  ;;  %v970_v13 = vsel %vm415_vm3, %v2306_v26, 0 }
 0x3a2   :  { %v1709_v14 = vpop.eup %1708 }
 0x3a3   :  { %v954_v15 = vpop.xlane.xlu1 %953  ;;  %v2292_v16 = vmul.f32 %v1709_v14, %v2252_v7 }
 0x3a4   :  { %v955_v17 = vsub.f32 %v951_v34, %v954_v15 }
 0x3a5   :  { %v699_v18 = vsel %vm339_vm2, %v2292_v16, 0.0 }
 0x3a6   :  { %v956_v19 = vmul.f32 1.442695, %v955_v17  ;;  %700 = vadd.xlane.f32.xlu0 %v699_v18 }
 0x3a8   :  { %1712 = vpow2.f32 %v956_v19 }
 0x3aa   :  { %v1711_v20 = vpop.eup %1710 }
 0x3ab   :  { %v2297_v21 = vmul.f32 %v1711_v20, %v2252_v7  ;;  %v1065_v7 = vpop.xlane.xlu1 %1064 }
 0x3ac   :  { %v1066_v31 = vsub.f32 %v2269_v41, %v1065_v7 }
 0x3ad   :  { %v812_v22 = vsel %vm339_vm2, %v2297_v21, 0.0 }
 0x3ae   :  { %813 = vadd.xlane.f32.xlu1 %v812_v22  ;;  %v1067_v34 = vmul.f32 1.442695, %v1066_v31 }
 0x3b2   :  { %v1713_v23 = vpop.eup %1712 }
 0x3b3   :  { %v2302_v24 = vmul.f32 %v1713_v23, %v2262_v32  ;;  %v1179_v28 = vpop.xlane.xlu1 %1178  ;;  %v892_v23 = vld [vmem:[#allocation7 + $0x8] sm:$0xff] }
 0x3b4   :  { %v1180_v29 = vsub.f32 %v1176_v47, %v1179_v28 }
 0x3b5   :  { %v959_v25 = vsel %vm339_vm2, %v2302_v24, 0.0 }
 0x3b6   :  { %960 = vadd.xlane.f32.xlu0 %v959_v25  ;;  %v1181_v30 = vmul.f32 1.442695, %v1180_v29 }
 0x3b8   :  { %1714 = vpow2.f32 %v1181_v30 }
 0x3b9   :  { %1716 = vpow2.f32 %v1067_v34 }
 0x3bb   :  { %v1292_v33 = vpop.xlane.xlu1 %1291 }
 0x3bc   :  { %v1293_v35 = vsub.f32 %v1289_v53, %v1292_v33 }
 0x3be   :  { %v1294_v36 = vmul.f32 1.442695, %v1293_v35 }
 0x3bf   :  { %1080 = vrot.lane.b32.xlu1 %v1478_v27, %s1987_s12  ;;  %v596_v46 = vpop.permute.xlu1 %595 }
 0x3c0   :  { %1718 = vpow2.f32 %v1294_v36  ;;  %v601_v53 = vsel %vm415_vm3, %v596_v46, 0 }
 0x3c2   :  { %v1715_v37 = vpop.eup %1714 }
 0x3c3   :  { %v2315_v38 = vmul.f32 %v1715_v37, %v2262_v32  ;;  %v1717_v42 = vpop.eup %1716 }
 0x3c5   :  { %v1184_v39 = vsel %vm339_vm2, %v2315_v38, 0.0 }
 0x3ca   :  { %v1719_v41 = vpop.eup %1718 }
 0x3cb   :  { %v2325_v44 = vmul.f32 %v1719_v41, %v2262_v32 }
 0x3cc   :  { %819 = vrot.lane.b32.xlu0 %v2266_v40, %s1986_s3  ;;  %v2320_v40 = vmul.f32 %v1717_v42, %v2262_v32 }
 0x3cd   :  { %v1297_v45 = vsel %vm339_vm2, %v2325_v44, 0.0 }
 0x3ce   :  { %v1070_v43 = vsel %vm339_vm2, %v2320_v40, 0.0 }
 0x3e3   :  { %1185 = vadd.xlane.f32.xlu1 %v1184_v39 }
 0x3eb   :  { %1071 = vadd.xlane.f32.xlu0 %v1070_v43 }
 0x3ef   :  { %1298 = vadd.xlane.f32.xlu0 %v1297_v45 }
 0x3f4   :  { %1304 = vrot.lane.b32.xlu1 %v1478_v27, %s1986_s3 }
 0x3f8   :  { %885 = vperm.xlu1 %1695, %v407_v49  }
 0x3fc   :  { %1369 = vperm.xlu1 %1695, %v892_v23  }
 0x405   :  { %1191 = vrot.lane.b32.xlu0 %v1478_v27, %s1985_s8 }
 0x418   :  { %v475_v47 = vpop.xlane.xlu1 %474 }
 0x419   :  { %v476_v48 = vadd.f32 1e-13, %v475_v47 }
 0x41b   :  { %1720 = vrcp.f32 %v476_v48 }
 0x425   :  { %v1721_v32 = vpop.eup %1720 }
 0x426   :  { %v478_v51 = vmul.f32 %v1721_v32, %v2282_v62 }
 0x428   :  { %v479_v52 = vpack.c.bf16 %v478_v51, %v478_v51 }
 0x42a   :  { %1555 = vmatmul.mubr.msk.bf16.vlgmr.msra.gmra.mrb[8].mxu0 %vm339_vm2, %v479_v52 }
 0x42b   :  { %1565 = vmatpush3.bf16.msra.mxu0 %v601_v53  ;;  %v587_v54 = vpop.xlane.xlu1 %586  ;;  %1566 = vmatprep.mubr.msk.bf16.mxu0 %vm1984_vm0, %v1983_v0 }
 0x42c   :  { %v588_v55 = vadd.f32 1e-13, %v587_v54  ;;  %1576 = vmatprep.subr.bf16.mxu0 %v1983_v0 }
 0x42e   :  { %1722 = vrcp.f32 %v588_v55 }
 0x433   :  { %v701_v57 = vpop.xlane.xlu0 %700 }
 0x434   :  { %v702_v58 = vadd.f32 1e-13, %v701_v57 }
 0x436   :  { %1724 = vrcp.f32 %v702_v58  ;;  %v1702_v58 = vld [vmem:[#allocation18] sm:$0xff]  }
 0x437   :  { %1643 = vmatpush3.bf16.msra.mxu1 %v1702_v58 }
 0x438   :  { %v1723_v59 = vpop.eup %1722  ;;  %1644 = vmatprep.subr.bf16.mxu1 %v1983_v0 }
 0x439   :  { %v590_v60 = vmul.f32 %v1723_v59, %v2287_v10 }
 0x43b   :  { %v814_v61 = vpop.xlane.xlu1 %813  ;;  %v591_v62 = vpack.c.bf16 %v590_v60, %v590_v60 }
 0x43c   :  { %v815_v63 = vadd.f32 1e-13, %v814_v61 }
 0x43d   :  { %1567 = vmatmul.mubr.msk.bf16.vlgmr.msra.gmra.mrb[12].mxu0 %vm339_vm2, %v591_v62 }
 0x43e   :  { %1726 = vrcp.f32 %v815_v63  ;;  %1577 = vmatpush3.bf16.msra.mxu0 %v712_v1  ;;  %1578 = vmatprep.mubr.msk.bf16.mxu0 %vm1984_vm0, %v1983_v0  ;;  %v1703_v63 = vld [vmem:[#allocation18 + $0x8] sm:$0xff]  }
 0x43f   :  { %1588 = vmatprep.subr.bf16.mxu0 %v1983_v0  ;;  %1645 = vmatpush3.bf16.msra.mxu1 %v1703_v63 }
 0x440   :  { %v1725_v2 = vpop.eup %1724 }
 0x441   :  { %v704_v3 = vmul.f32 %v1725_v2, %v2292_v16  ;;  %v1081_v16 = vpop.permute.xlu1 %1080 }
 0x442   :  { %v1086_v18 = vsel %vm415_vm3, %v1081_v16, 0 }
 0x443   :  { %v961_v4 = vpop.xlane.xlu0 %960  ;;  %v705_v5 = vpack.c.bf16 %v704_v3, %v704_v3 }
 0x444   :  { %v962_v6 = vadd.f32 1e-13, %v961_v4 }
 0x445   :  { %1579 = vmatmul.mubr.msk.bf16.vlgmr.msra.gmra.mrb[16].mxu0 %vm339_vm2, %v705_v5 }
 0x446   :  { %1728 = vrcp.f32 %v962_v6  ;;  %1590 = vmatprep.mubr.msk.bf16.mxu0 %vm1984_vm0, %v1983_v0 }
 0x447   :  { %v820_v8 = vpop.permute.xlu0 %819 }
 0x448   :  { %v1727_v9 = vpop.eup %1726  ;;  %v825_v10 = vsel %vm415_vm3, %v820_v8, 0 }
 0x449   :  { %v817_v11 = vmul.f32 %v1727_v9, %v2297_v21  ;;  %1589 = vmatpush3.bf16.msra.mxu0 %v825_v10 }
 0x44a   :  { %1600 = vmatprep.subr.bf16.mxu0 %v1983_v0 }
 0x44b   :  { %v818_v12 = vpack.c.bf16 %v817_v11, %v817_v11 }
 0x44d   :  { %1591 = vmatmul.mubr.msk.bf16.vlgmr.msra.gmra.mrb[20].mxu0 %vm339_vm2, %v818_v12 }
 0x44e   :  { %1601 = vmatpush3.bf16.msra.mxu0 %v970_v13  ;;  %1602 = vmatprep.mubr.msk.bf16.mxu0 %vm1984_vm0, %v1983_v0 }
 0x44f   :  { %1612 = vmatprep.subr.bf16.mxu0 %v1983_v0 }
 0x450   :  { %v1729_v14 = vpop.eup %1728 }
 0x451   :  { %v964_v15 = vmul.f32 %v1729_v14, %v2302_v24 }
 0x453   :  { %v965_v17 = vpack.c.bf16 %v964_v15, %v964_v15 }
 0x455   :  { %1603 = vmatmul.mubr.msk.bf16.vlgmr.msra.gmra.mrb[24].mxu0 %vm339_vm2, %v965_v17 }
 0x456   :  { %1613 = vmatpush3.bf16.msra.mxu0 %v1086_v18  ;;  %1614 = vmatprep.mubr.msk.bf16.mxu0 %vm1984_vm0, %v1983_v0 }
 0x457   :  { %1624 = vmatprep.subr.bf16.mxu0 %v1983_v0 }
 0x470   :  { %v1186_v19 = vpop.xlane.xlu1 %1185 }
 0x471   :  { %v1187_v22 = vadd.f32 1e-13, %v1186_v19 }
 0x474   :  { %v1305_v33 = vpop.permute.xlu1 %1304 }
 0x475   :  { %v1310_v36 = vsel %vm415_vm3, %v1305_v33, 0 }
 0x478   :  { %v1072_v20 = vpop.xlane.xlu0 %1071 }
 0x479   :  { %v1073_v21 = vadd.f32 1e-13, %v1072_v20 }
 0x47b   :  { %1730 = vrcp.f32 %v1073_v21 }
 0x47c   :  { %1732 = vrcp.f32 %v1187_v22  ;;  %v1299_v24 = vpop.xlane.xlu0 %1298 }
 0x47d   :  { %v1300_v25 = vadd.f32 1e-13, %v1299_v24 }
 0x47f   :  { %1734 = vrcp.f32 %v1300_v25 }
 0x480   :  { %v1192_v7 = vpop.permute.xlu0 %1191 }
 0x481   :  { %v1197_v30 = vsel %vm415_vm3, %v1192_v7, 0 }
 0x485   :  { %v1731_v26 = vpop.eup %1730 }
 0x486   :  { %v1075_v27 = vmul.f32 %v1731_v26, %v2320_v40  ;;  %v1733_v29 = vpop.eup %1732 }
 0x487   :  { %v1189_v31 = vmul.f32 %v1733_v29, %v2315_v38 }
 0x488   :  { %v1076_v28 = vpack.c.bf16 %v1075_v27, %v1075_v27 }
 0x489   :  { %v1190_v34 = vpack.c.bf16 %v1189_v31, %v1189_v31  ;;  %v1735_v35 = vpop.eup %1734 }
 0x48a   :  { %1615 = vmatmul.mubr.msk.bf16.vlgmr.msra.gmra.mrb[28].mxu0 %vm339_vm2, %v1076_v28  ;;  %v1302_v37 = vmul.f32 %v1735_v35, %v2325_v44 }
 0x48b   :  { %1625 = vmatpush3.bf16.msra.mxu0 %v1197_v30  ;;  %1626 = vmatprep.mubr.msk.bf16.mxu0 %vm1984_vm0, %v1983_v0 }
 0x48c   :  { %1636 = vmatprep.subr.bf16.mxu0 %v1983_v0  ;;  %v1303_v39 = vpack.c.bf16 %v1302_v37, %v1302_v37 }
 0x492   :  { %1627 = vmatmul.mubr.msk.bf16.vlgmr.msra.gmra.mrb[32].mxu0 %vm339_vm2, %v1190_v34 }
 0x493   :  { %1637 = vmatpush3.bf16.msra.mxu0 %v1310_v36  ;;  %1638 = vmatprep.mubr.msk.bf16.mxu0 %vm1984_vm0, %v1983_v0  ;;  %v886_v0 = vpop.permute.xlu1 %885 }
 0x497   :  { %v1370_v10 = vpop.permute.xlu1 %1369 }
 0x49a   :  { %1639 = vmatmul.mubr.msk.bf16.vlgmr.msra.gmra.mrb[36].mxu0 %vm339_vm2, %v1303_v39 }
 0x4fd   :  { %v520_v42 = vpop.f32.mrb[8].mxu0 }
 0x4fe   :  { %v1556_v38 = vpop.f32.mrb[9].mxu0 }
 0x4ff   :  { %v523_v40 = vpop.f32.mrb[10].mxu0 }
 0x500   :  { %v1557_v41 = vpop.f32.mrb[11].mxu0 }
 0x510   :  { %v637_v43 = vpop.f32.mrb[12].mxu0 }
 0x511   :  { %868 = vrot.lane.b32.xlu1 %v637_v43, %s1971_s22  ;;  %v1568_v45 = vpop.f32.mrb[13].mxu0 }
 0x512   :  { %v640_v46 = vpop.f32.mrb[14].mxu0 }
 0x513   :  { %v1569_v47 = vpop.f32.mrb[15].mxu0 }
 0x518   :  { %v748_v48 = vpop.f32.mrb[16].mxu0 }
 0x519   :  { %872 = vrot.lane.b32.xlu0 %v748_v48, %s1972_s1  ;;  %v1580_v49 = vpop.f32.mrb[17].mxu0 }
 0x51a   :  { %v751_v50 = vpop.f32.mrb[18].mxu0 }
 0x51b   :  { %v1581_v32 = vpop.f32.mrb[19].mxu0 }
 0x520   :  { %v861_v44 = vpop.f32.mrb[20].mxu0 }
 0x521   :  { %876 = vrot.lane.b32.xlu0 %v861_v44, %s1989_s18  ;;  %v1592_v51 = vpop.f32.mrb[21].mxu0 }
 0x522   :  { %v864_v52 = vpop.f32.mrb[22].mxu0 }
 0x523   :  { %v1593_v53 = vpop.f32.mrb[23].mxu0 }
 0x528   :  { %v1006_v54 = vpop.f32.mrb[24].mxu0 }
 0x529   :  { %v1604_v55 = vpop.f32.mrb[25].mxu0 }
 0x52a   :  { %v1009_v56 = vpop.f32.mrb[26].mxu0 }
 0x52b   :  { %v1605_v57 = vpop.f32.mrb[27].mxu0 }
 0x55d   :  { %v1122_v59 = vpop.f32.mrb[28].mxu0 }
 0x55e   :  { %1353 = vrot.lane.b32.xlu1 %v1122_v59, %s1971_s22  ;;  %v1616_v60 = vpop.f32.mrb[29].mxu0 }
 0x55f   :  { %v1125_v61 = vpop.f32.mrb[30].mxu0 }
 0x560   :  { %v1617_v62 = vpop.f32.mrb[31].mxu0 }
 0x565   :  { %v1233_v1 = vpop.f32.mrb[32].mxu0 }
 0x566   :  { %1357 = vrot.lane.b32.xlu1 %v1233_v1, %s1972_s1  ;;  %v1628_v2 = vpop.f32.mrb[33].mxu0  ;;  %s1990_s1 = smov [#allocation19]  }
 0x567   :  { %v1236_v3 = vpop.f32.mrb[34].mxu0  ;;  %s1442_s20 = sshll.u32 %s1990_s1, 4  ;;  %s1443_s20 = int_to_ptr.vmem [resolvable:$true] %s1442_s20 }
 0x568   :  { %v1629_v4 = vpop.f32.mrb[35].mxu0  ;;  %s1934_s23 = scalar_lea.vmem %s1443_s20, 256  ;;  %p1939_p3 = scmp.lt.s32.totalorder %s1443_s20, %s1443_s20 }
 0x569   :  { %p1935_p2 = scmp.ne.s32.totalorder %s1443_s20, %s1934_s23  ;;  %p1940_p4 = scmp.lt.s32.totalorder %s1934_s23, %s1934_s23 }
 0x56b   :  { %p1941_p5 = por %p1940_p4, %p1939_p3 }
 0x56d   :  { %v1346_v5 = vpop.f32.mrb[36].mxu0  ;;  %p1942_p6 = pnand %p1941_p5, %p1935_p2 }
 0x56e   :  { %1361 = vrot.lane.b32.xlu1 %v1346_v5, %s1989_s18  ;;  %v1640_v6 = vpop.f32.mrb[37].mxu0 }
 0x56f   :  { %v1349_v8 = vpop.f32.mrb[38].mxu0 }
 0x570   :  { %v1641_v9 = vpop.f32.mrb[39].mxu0 }
 0x583   :  { %v869_v11 = vpop.permute.xlu1 %868 }
 0x584   :  { %v879_v16 = vsel %vm339_vm2, %v520_v42, %v869_v11 }
 0x58b   :  { %v873_v12 = vpop.permute.xlu0 %872 }
 0x58c   :  { %v880_v17 = vsel %vm174_vm1, %v879_v16, %v873_v12 }
 0x593   :  { %v877_v14 = vpop.permute.xlu0 %876 }
 0x594   :  { %v882_v18 = vsel %vm881_vm5, %v880_v17, %v877_v14 }
 0x595   :  { %v888_v23 = vmul.f32 %v886_v0, %v882_v18 }
 0x5d0   :  { %v1354_v13 = vpop.permute.xlu1 %1353 }
 0x5d1   :  { %v1364_v19 = vsel %vm339_vm2, %v1006_v54, %v1354_v13 }
 0x5d8   :  { %v1358_v15 = vpop.permute.xlu1 %1357 }
 0x5d9   :  { %v1365_v20 = vsel %vm174_vm1, %v1364_v19, %v1358_v15 }
 0x5e0   :  { %v1362_v21 = vpop.permute.xlu1 %1361 }
 0x5e1   :  { %v1366_v22 = vsel %vm881_vm5, %v1365_v20, %v1362_v21 }
 0x5e2   :  { %v1372_v24 = vmul.f32 %v1370_v10, %v1366_v22 }
 0x5e4   :  { %v1373_v25 = vpack.c.bf16 %v1372_v24, %v888_v23 }
 0x5e6   :  { %1647 = vmatmul.mubr.msk.bf16.vlgmr.msra.gmra.mrb[36].mxu1 %vm1390_vm6, %v1373_v25 }
 0x6b9   :  { %v1428_v26 = vpop.f32.mrb[36].mxu1 }
 0x6ba   :  { %1435 = vst.msk [vmem:[#allocation19] sm:$0xff] %vm1390_vm6, %v1428_v26  ;;  %v1648_v27 = vpop.f32.mrb[37].mxu1 }
 0x6bb   :  { %v1431_v7 = vpop.f32.mrb[38].mxu1 }
 0x6bc   :  { %1436 = vst.msk [vmem:[#allocation19 + $0x8] sm:$0xff] %vm1390_vm6, %v1431_v7  ;;  %v1649_v28 = vpop.f32.mrb[39].mxu1 }
 0x6bd   :  { %1945 = shalt.err (!%p1942_p6)
}
 0x6be   :  { %s1946_s24 = scalar_lea.hbm %s2408_s9, 256 }
 0x6bf   :  { %p1947_p7 = scmp.ne.s32.totalorder %s2408_s9, %s1946_s24  ;;  %p1950_p8 = scmp.lt.u32.totalorder %s1946_s24, %s2408_s9 }
 0x6c1   :  { %p1952_p9 = pnand %p1950_p8, %p1947_p7 }
 0x6c3   :  { %1955 = shalt.err (!%p1952_p9)
}
 0x6c4   :  { %1448 = dma.vmem_to_hbm [thread:$0]  %s1443_s20, 256, %s2408_s9, [#allocation6], %s1970_s21, %s1970_s21, %s1971_s22  }
 0x6c5   :  { %1966 = dma.done.wait [#allocation6], 256  }
 0x6c6   :  { %1967 = vsyncadd [#allocation6], 4294967040 }
 0x6c7   :  { %1452 = vsyncpa [#allocation5], 1 }
 0x6c8   :  { %1453 = vsyncpa [#allocation8], 1 }
 0x6c9   :  { %1454 = vsyncpa [#allocation11], 1 }
 0x6ca   :  { %1455 = vsyncpa [#allocation14], 1 }
 0x6cb   :  { %1456 = vsyncpa [#allocation17], 1 }
 0x6cc   :  { %1457 = vsyncpa [#allocation6], 1 }

</bundles_post_ra>
